<compile_context>
chip_gen: v7x
topology: tpu7x:2x2x1
jax: 0.10.0
libtpu: 0.0.40
codegen_flags: <defaults>
</compile_context>

<pallas_src>
import functools

import jax
import jax.numpy as jnp
from jax import lax
from jax.experimental import pallas as pl
from jax.experimental.pallas import tpu as pltpu


def _round_up(x, m):
    return ((x + m - 1) // m) * m


def _block_kernel(*refs, eps, real_dim, d_pad, has_residual):
    if has_residual:
        (h_ref, r_ref, nw_ref, nb_ref, mw_ref, mb_ref,
         out_ref, res_out_ref, normed_ref) = refs
    else:
        (h_ref, nw_ref, nb_ref, mw_ref, mb_ref,
         out_ref, res_out_ref, normed_ref) = refs
        r_ref = None

    # Residual add + LayerNorm + bf16 cast depend only on the row tile: run them
    # once per row tile (first N step) and cache the normalized activations in a
    # VMEM scratch so j > 0 steps only touch the MXU.
    @pl.when(pl.program_id(1) == 0)
    def _():
        h = h_ref[...].astype(jnp.float32)
        res = h + r_ref[...] if has_residual else h        # residual_in_fp32
        res_out_ref[...] = res

        inv_d = 1.0 / real_dim
        mean = jnp.sum(res, axis=-1, keepdims=True) * inv_d
        centered = res - mean
        if real_dim != d_pad:
            # Zero-padded feature columns must not contribute to the variance.
            col = lax.broadcasted_iota(jnp.int32, centered.shape, 1)
            csq = jnp.where(col < real_dim, centered, 0.0)
        else:
            csq = centered
        var = jnp.sum(csq * csq, axis=-1, keepdims=True) * inv_d
        inv = lax.rsqrt(var + eps)
        # Padded columns of norm weight/bias are zero -> normed is zero there,
        # so they contribute nothing to the mixer matmul.
        normed = centered * inv * nw_ref[...] + nb_ref[...]
        normed_ref[...] = normed.astype(jnp.bfloat16)

    acc = jnp.dot(normed_ref[...], mw_ref[...],
                  preferred_element_type=jnp.float32)      # bf16 MXU, f32 acc
    out_ref[...] = (acc + mb_ref[...]).astype(out_ref.dtype)


def block_forward(hidden_states, residual, norm_weight, norm_bias,
                  mixer_weight, mixer_bias, *, eps=1e-5):
    """hidden_states: (B,S,D) any float dtype; residual: (B,S,D) or None.

    Returns (mixer_out [hidden_states.dtype], residual [f32])."""
    B, S, D = hidden_states.shape
    rows = B * S
    has_residual = residual is not None

    d_pad = _round_up(D, 128)
    h_itemsize = jnp.dtype(hidden_states.dtype).itemsize
    out_itemsize = h_itemsize

    # ---- VMEM budget (v5e/v6e: 128 MiB, v7x: 64 MiB per TensorCore) ----------
    try:
        vmem_cap = int(pltpu.get_tpu_info().vmem_capacity_bytes)
    except Exception:
        vmem_cap = 64 << 20
    usable = min(vmem_cap * 3 // 4, 96 << 20)

    # ---- tile selection ------------------------------------------------------
    row_tile = 256
    if d_pad >= 4096 or rows <= 256:
        row_tile = 128            # VMEM headroom / >=2 row tiles for megacore
    row_tile = min(row_tile, _round_up(rows, 8))

    def _footprint(rt, ct):
        return (2 * rt * d_pad * h_itemsize                       # hidden (dbuf)
                + (2 * rt * d_pad * 4 if has_residual else 0)     # residual
                + 2 * rt * d_pad * 4                              # residual out
                + 2 * d_pad * ct * 2                              # weight bf16
                + 2 * rt * ct * out_itemsize                      # mixer out
                + rt * d_pad * 2                                  # normed scratch
                + 8 * d_pad * 4)                                  # small vectors

    if _footprint(row_tile, d_pad) <= usable:
        # Weight fully VMEM-resident: fetched from HBM exactly once, N axis = 1.
        col_tile = d_pad
    else:
        col_tile = 512 if d_pad % 512 == 0 else (256 if d_pad % 256 == 0 else 128)
        if _footprint(row_tile, col_tile) > usable and row_tile > 128:
            row_tile = 128
    vmem_limit = int(min(max(_footprint(row_tile, col_tile) * 5 // 4, 32 << 20),
                         usable))

    grid = (pl.cdiv(rows, row_tile), d_pad // col_tile)

    # ---- operands (only the feature dim is ever padded) ----------------------
    def pad_cols(x2d):
        pad = d_pad - x2d.shape[-1]
        return jnp.pad(x2d, ((0, 0), (0, pad))) if pad else x2d

    h2 = pad_cols(hidden_states.reshape(rows, D))                 # native dtype
    nw = pad_cols(norm_weight.reshape(1, D).astype(jnp.float32))
    nb = pad_cols(norm_bias.reshape(1, D).astype(jnp.float32))
    mw = mixer_weight.T.astype(jnp.float32)                       # (in, out)
    if d_pad != D:
        mw = jnp.pad(mw, ((0, d_pad - D), (0, d_pad - D)))
    mw = mw.astype(jnp.bfloat16)
    mb = pad_cols(mixer_bias.reshape(1, D).astype(jnp.float32))

    operands = [h2]
    in_specs = [pl.BlockSpec((row_tile, d_pad), lambda i, j: (i, 0))]
    io_aliases = {}
    if has_residual:
        r2 = pad_cols(residual.reshape(rows, D).astype(jnp.float32))
        operands.append(r2)
        in_specs.append(pl.BlockSpec((row_tile, d_pad), lambda i, j: (i, 0)))
        io_aliases = {1: 1}       # residual output reuses residual input buffer
    operands += [nw, nb, mw, mb]
    in_specs += [
        pl.BlockSpec((1, d_pad), lambda i, j: (0, 0)),            # norm weight
        pl.BlockSpec((1, d_pad), lambda i, j: (0, 0)),            # norm bias
        pl.BlockSpec((d_pad, col_tile), lambda i, j: (0, j)),     # mixer W (bf16)
        pl.BlockSpec((1, col_tile), lambda i, j: (0, j)),         # mixer bias
    ]

    out, res_out = pl.pallas_call(
        functools.partial(_block_kernel, eps=eps, real_dim=D, d_pad=d_pad,
                          has_residual=has_residual),
        out_shape=(
            jax.ShapeDtypeStruct((rows, d_pad), hidden_states.dtype),
            jax.ShapeDtypeStruct((rows, d_pad), jnp.float32),
        ),
        grid_spec=pltpu.PrefetchScalarGridSpec(
            num_scalar_prefetch=0,
            grid=grid,
            in_specs=in_specs,
            out_specs=[
                pl.BlockSpec((row_tile, col_tile), lambda i, j: (i, j)),
                pl.BlockSpec((row_tile, d_pad), lambda i, j: (i, 0)),
            ],
            scratch_shapes=[pltpu.VMEM((row_tile, d_pad), jnp.bfloat16)],
        ),
        input_output_aliases=io_aliases,
        compiler_params=pltpu.CompilerParams(
            dimension_semantics=("parallel", "arbitrary"),
            vmem_limit_bytes=vmem_limit,
        ),
    )(*operands)

    if d_pad != D:
        out = out[:, :D]
        res_out = res_out[:, :D]
    return out.reshape(B, S, D), res_out.reshape(B, S, D)


def _reference(hidden_states, residual, nw, nb, mw, mb, eps=1e-5):
    h = hidden_states.astype(jnp.float32)
    res = h + residual.astype(jnp.float32) if residual is not None else h
    mean = jnp.mean(res, axis=-1, keepdims=True)
    var = jnp.mean((res - mean) ** 2, axis=-1, keepdims=True)
    normed = (res - mean) / jnp.sqrt(var + eps) * nw + nb
    out = normed @ mw.T + mb
    return out, res


if __name__ == "__main__":
    key = jax.random.PRNGKey(0)
    k1, k2, k3, k4, k5, k6, k7 = jax.random.split(key, 7)

    # Case 1: lane-aligned D, residual provided, multiple row tiles.
    B, S, D = 2, 256, 128
    h = jax.random.normal(k1, (B, S, D), dtype=jnp.float32)
    r = jax.random.normal(k2, (B, S, D), dtype=jnp.float32)
    norm_w = jnp.ones((D,), dtype=jnp.float32)          # PyTorch LayerNorm init
    norm_b = jnp.zeros((D,), dtype=jnp.float32)
    mix_w = jax.random.normal(k3, (D, D), dtype=jnp.float32) * 0.05
    mix_b = jax.random.normal(k4, (D,), dtype=jnp.float32) * 0.01

    ref_out, ref_res = _reference(h, r, norm_w, norm_b, mix_w, mix_b)
    out, res_out = block_forward(h, r, norm_w, norm_b, mix_w, mix_b)
    jax.block_until_ready((out, res_out))
    assert jnp.allclose(res_out, ref_res, atol=1e-5, rtol=1e-5)
    assert jnp.allclose(out, ref_out, atol=2e-2, rtol=2e-2)   # bf16 MXU path

    # Case 2: unaligned D, non-tile rows, residual=None (first block).
    B2, S2, D2 = 2, 56, 96
    h2 = jax.random.normal(k5, (B2, S2, D2), dtype=jnp.float32)
    norm_w2 = 1.0 + 0.1 * jax.random.normal(k6, (D2,), dtype=jnp.float32)
    norm_b2 = jnp.full((D2,), 0.05, dtype=jnp.float32)
    mix_w2 = jax.random.normal(k3, (D2, D2), dtype=jnp.float32) * 0.05
    mix_b2 = jax.random.normal(k4, (D2,), dtype=jnp.float32) * 0.01

    ref_out2, ref_res2 = _reference(h2, None, norm_w2, norm_b2, mix_w2, mix_b2)
    out2, res2 = block_forward(h2, None, norm_w2, norm_b2, mix_w2, mix_b2)
    jax.block_until_ready((out2, res2))
    assert jnp.allclose(res2, ref_res2, atol=1e-5, rtol=1e-5)
    assert jnp.allclose(out2, ref_out2, atol=2e-2, rtol=2e-2)

    # Case 3: native bf16 hidden_states with f32 residual (residual_in_fp32).
    B3, S3, D3 = 2, 128, 128
    h3 = jax.random.normal(k7, (B3, S3, D3), dtype=jnp.float32).astype(jnp.bfloat16)
    r3 = jax.random.normal(k2, (B3, S3, D3), dtype=jnp.float32)
    ref_out3, ref_res3 = _reference(h3, r3, norm_w, norm_b, mix_w, mix_b)
    out3, res3 = block_forward(h3, r3, norm_w, norm_b, mix_w, mix_b)
    jax.block_until_ready((out3, res3))
    assert out3.dtype == jnp.bfloat16
    assert jnp.allclose(res3, ref_res3, atol=1e-5, rtol=1e-5)
    assert jnp.allclose(out3.astype(jnp.float32), ref_out3, atol=5e-2, rtol=5e-2)

    print("KERNEL_OK")
</pallas_src>

<mosaic_0001>
module attributes {stable_mosaic.version = 11 : i64} {
  func.func @_block_kernel(%arg0: i32, %arg1: i32, %arg2: memref<256x128xf32, #tpu.memory_space<vmem>>, %arg3: memref<256x128xf32, #tpu.memory_space<vmem>>, %arg4: memref<1x128xf32, #tpu.memory_space<vmem>>, %arg5: memref<1x128xf32, #tpu.memory_space<vmem>>, %arg6: memref<128x128xbf16, #tpu.memory_space<vmem>>, %arg7: memref<1x128xf32, #tpu.memory_space<vmem>>, %arg8: memref<256x128xf32, #tpu.memory_space<vmem>>, %arg9: memref<256x128xf32, #tpu.memory_space<vmem>>, %arg10: memref<256x128xbf16, #tpu.memory_space<vmem>>) attributes {dimension_semantics = [#tpu.dimension_semantics<parallel>, #tpu.dimension_semantics<arbitrary>], iteration_bounds = array<i64: 2, 1>, scalar_prefetch = 0 : i64, scratch_operands = 1 : i64, tpu.core_type = #tpu.core_type<tc>, window_params = [{transform_indices = @transform_0, window_bounds = array<i64: 256, 128>}, {transform_indices = @transform_1, window_bounds = array<i64: 256, 128>}, {pipeline_mode = #tpu.pipeline_mode<synchronous>, transform_indices = @transform_2, window_bounds = array<i64: 1, 128>}, {pipeline_mode = #tpu.pipeline_mode<synchronous>, transform_indices = @transform_3, window_bounds = array<i64: 1, 128>}, {transform_indices = @transform_4, window_bounds = array<i64: 128, 128>}, {transform_indices = @transform_5, window_bounds = array<i64: 1, 128>}, {transform_indices = @transform_6, window_bounds = array<i64: 256, 128>}, {transform_indices = @transform_7, window_bounds = array<i64: 256, 128>}]} {
    %c0_i32 = arith.constant 0 : i32
    %0 = arith.cmpi eq, %arg1, %c0_i32 : i32
    %1 = arith.extui %0 : i1 to i32
    %c0_i32_0 = arith.constant 0 : i32
    %2 = arith.cmpi ne, %1, %c0_i32_0 : i32
    scf.if %2 {
      %c0_8 = arith.constant 0 : index
      %c0_9 = arith.constant 0 : index
      %10 = vector.load %arg2[%c0_8, %c0_9] : memref<256x128xf32, #tpu.memory_space<vmem>>, vector<256x128xf32>
      %c0_10 = arith.constant 0 : index
      %c0_11 = arith.constant 0 : index
      %11 = vector.load %arg3[%c0_10, %c0_11] : memref<256x128xf32, #tpu.memory_space<vmem>>, vector<256x128xf32>
      %12 = arith.addf %10, %11 : vector<256x128xf32>
      %c0_12 = arith.constant 0 : index
      %c0_13 = arith.constant 0 : index
      %13 = vector.load %arg9[%c0_12, %c0_13] : memref<256x128xf32, #tpu.memory_space<vmem>>, vector<256x128xf32>
      tpu.vector_store %arg9[%c0_12, %c0_13], %12 {strides = array<i32>} : memref<256x128xf32, #tpu.memory_space<vmem>>, vector<256x128xf32>,
      %cst_14 = arith.constant dense<0.000000e+00> : vector<256xf32>
      %14 = vector.multi_reduction <add>, %12, %cst_14 [1] : vector<256x128xf32> to vector<256xf32>
      %15 = vector.shape_cast %14 : vector<256xf32> to vector<256x1xf32>
      %cst_15 = arith.constant 7.812500e-03 : f32
      %16 = vector.broadcast %cst_15 : f32 to vector<256x1xf32>
      %17 = arith.mulf %15, %16 : vector<256x1xf32>
      %18 = vector.broadcast %17 : vector<256x1xf32> to vector<256x128xf32>
      %19 = arith.subf %12, %18 : vector<256x128xf32>
      %20 = arith.mulf %19, %19 : vector<256x128xf32>
      %cst_16 = arith.constant dense<0.000000e+00> : vector<256xf32>
      %21 = vector.multi_reduction <add>, %20, %cst_16 [1] : vector<256x128xf32> to vector<256xf32>
      %22 = vector.shape_cast %21 : vector<256xf32> to vector<256x1xf32>
      %cst_17 = arith.constant 7.812500e-03 : f32
      %23 = vector.broadcast %cst_17 : f32 to vector<256x1xf32>
      %24 = arith.mulf %22, %23 : vector<256x1xf32>
      %cst_18 = arith.constant 9.99999974E-6 : f32
      %25 = vector.broadcast %cst_18 : f32 to vector<256x1xf32>
      %26 = arith.addf %24, %25 : vector<256x1xf32>
      %27 = math.rsqrt %26 : vector<256x1xf32>
      %28 = vector.broadcast %27 : vector<256x1xf32> to vector<256x128xf32>
      %29 = arith.mulf %19, %28 : vector<256x128xf32>
      %c0_19 = arith.constant 0 : index
      %c0_20 = arith.constant 0 : index
      %30 = vector.load %arg4[%c0_19, %c0_20] : memref<1x128xf32, #tpu.memory_space<vmem>>, vector<1x128xf32>
      %31 = vector.broadcast %30 : vector<1x128xf32> to vector<256x128xf32>
      %32 = arith.mulf %29, %31 : vector<256x128xf32>
      %c0_21 = arith.constant 0 : index
      %c0_22 = arith.constant 0 : index
      %33 = vector.load %arg5[%c0_21, %c0_22] : memref<1x128xf32, #tpu.memory_space<vmem>>, vector<1x128xf32>
      %34 = vector.broadcast %33 : vector<1x128xf32> to vector<256x128xf32>
      %35 = arith.addf %32, %34 : vector<256x128xf32>
      %36 = arith.truncf %35 : vector<256x128xf32> to vector<256x128xbf16>
      %c0_23 = arith.constant 0 : index
      %c0_24 = arith.constant 0 : index
      %37 = vector.load %arg10[%c0_23, %c0_24] : memref<256x128xbf16, #tpu.memory_space<vmem>>, vector<256x128xbf16>
      tpu.vector_store %arg10[%c0_23, %c0_24], %36 {strides = array<i32>} : memref<256x128xbf16, #tpu.memory_space<vmem>>, vector<256x128xbf16>,
    } else {
    }
    %c0 = arith.constant 0 : index
    %c0_1 = arith.constant 0 : index
    %3 = vector.load %arg10[%c0, %c0_1] : memref<256x128xbf16, #tpu.memory_space<vmem>>, vector<256x128xbf16>
    %c0_2 = arith.constant 0 : index
    %c0_3 = arith.constant 0 : index
    %4 = vector.load %arg6[%c0_2, %c0_3] : memref<128x128xbf16, #tpu.memory_space<vmem>>, vector<128x128xbf16>
    %cst = arith.constant dense<0.000000e+00> : vector<256x128xf32>
    %5 = tpu.matmul %3, %4, %cst {dimension_numbers = #tpu.dot_dimension_numbers<[1], [0], [0], [1], [0, 0, 1, 1], [], []>} : vector<256x128xbf16>, vector<128x128xbf16>, vector<256x128xf32> -> vector<256x128xf32>
    %c0_4 = arith.constant 0 : index
    %c0_5 = arith.constant 0 : index
    %6 = vector.load %arg7[%c0_4, %c0_5] : memref<1x128xf32, #tpu.memory_space<vmem>>, vector<1x128xf32>
    %7 = vector.broadcast %6 : vector<1x128xf32> to vector<256x128xf32>
    %8 = arith.addf %5, %7 : vector<256x128xf32>
    %c0_6 = arith.constant 0 : index
    %c0_7 = arith.constant 0 : index
    %9 = vector.load %arg8[%c0_6, %c0_7] : memref<256x128xf32, #tpu.memory_space<vmem>>, vector<256x128xf32>
    tpu.vector_store %arg8[%c0_6, %c0_7], %8 {strides = array<i32>} : memref<256x128xf32, #tpu.memory_space<vmem>>, vector<256x128xf32>,
    return
  }
  func.func @transform_0(%arg0: i32, %arg1: i32) -> (i32, i32) {
    %c0_i32 = arith.constant 0 : i32
    %c0_i32_0 = arith.constant 0 : i32
    return %arg0, %c0_i32 : i32, i32
  }
  func.func @transform_1(%arg0: i32, %arg1: i32) -> (i32, i32) {
    %c0_i32 = arith.constant 0 : i32
    %c0_i32_0 = arith.constant 0 : i32
    return %arg0, %c0_i32 : i32, i32
  }
  func.func @transform_2(%arg0: i32, %arg1: i32) -> (i32, i32) {
    %c0_i32 = arith.constant 0 : i32
    %c0_i32_0 = arith.constant 0 : i32
    %c0_i32_1 = arith.constant 0 : i32
    return %c0_i32, %c0_i32_0 : i32, i32
  }
  func.func @transform_3(%arg0: i32, %arg1: i32) -> (i32, i32) {
    %c0_i32 = arith.constant 0 : i32
    %c0_i32_0 = arith.constant 0 : i32
    %c0_i32_1 = arith.constant 0 : i32
    return %c0_i32, %c0_i32_0 : i32, i32
  }
  func.func @transform_4(%arg0: i32, %arg1: i32) -> (i32, i32) {
    %c0_i32 = arith.constant 0 : i32
    %c0_i32_0 = arith.constant 0 : i32
    return %c0_i32, %arg1 : i32, i32
  }
  func.func @transform_5(%arg0: i32, %arg1: i32) -> (i32, i32) {
    %c0_i32 = arith.constant 0 : i32
    %c0_i32_0 = arith.constant 0 : i32
    return %c0_i32, %arg1 : i32, i32
  }
  func.func @transform_6(%arg0: i32, %arg1: i32) -> (i32, i32) {
    %c0_i32 = arith.constant 0 : i32
    return %arg0, %arg1 : i32, i32
  }
  func.func @transform_7(%arg0: i32, %arg1: i32) -> (i32, i32) {
    %c0_i32 = arith.constant 0 : i32
    %c0_i32_0 = arith.constant 0 : i32
    return %arg0, %c0_i32 : i32, i32
  }
}

</mosaic_0001>

<bundles_post_ra>
// kernel: tpu_custom_call.1
= control target key start
LH: loop header
LB: loop body
LE: loop exit
PB: predicated region body
PF: predicated region fallthrough
CT: control target
= control target key end

     0   :  { %13 = vsyncpa [#allocation4], 0  ;;  %s2722_s0 = inlined_call_operand.vmem [shape: f32[512,128], index: 0, kind: input, shape index: {}]   ;;  %s2723_s1 = inlined_call_operand.hbm [shape: f32[512,128], index: 1, kind: input, shape index: {}, may-alias: {1,7}]   ;;  %s2724_s2 = inlined_call_operand.vmem [shape: f32[1,128], index: 2, kind: input, shape index: {}]   ;;  %s2725_s3 = inlined_call_operand.vmem [shape: f32[1,128], index: 3, kind: input, shape index: {}]   ;;  %s2726_s4 = inlined_call_operand.vmem [shape: bf16[128,128], index: 4, kind: input, shape index: {}]   ;;  %s2727_s5 = inlined_call_operand.vmem [shape: f32[1,128], index: 5, kind: input, shape index: {}]   ;;  %s2728_s6 = inlined_call_operand.hbm [shape: f32[512,128], index: 6, kind: output, shape index: {0}]   ;;  %s2729_s7 = inlined_call_operand.hbm [shape: f32[512,128], index: 7, kind: output, shape index: {1}, may-alias: {1,7}]  }
   0x1   :  { %15 = vsyncpa [#allocation4 + $0x1], 0 }
   0x2   :  { %16 = vsyncpa [#allocation5], 0 }
   0x3   :  { %18 = vsyncpa [#allocation5 + $0x1], 0 }
   0x4   :  { %19 = vsyncpa [#allocation8], 0 }
   0x5   :  { %21 = vsyncpa [#allocation8 + $0x1], 0  ;;  %s1904_s24 = smov 0   ;;  %s1906_s25 = smov 0  }
   0x6   :  { %s1908_s26 = smov 0   ;;  %s1910_s27 = smov 0  }
   0x7   :  { %s1912_s28 = smov 0   ;;  %s1914_s29 = smov 0  }
   0x8 LB: > { %s1443_s30 = sadd.s32 4294967295, %s1855_s29   ;;  %s1444_s8 = sadd.s32 4294967294, %s1855_s29   ;;  %s1855_s29 = sphi %s1914_s29, %s27_s29   ;;  %s1851_s28 = sphi %s1912_s28, %s2746_s28   ;;  %s1847_s27 = sphi %s1910_s27, %s2745_s27   ;;  %s1843_s26 = sphi %s1908_s26, %s2744_s26   ;;  %s1839_s25 = sphi %s1906_s25, %s2743_s25   ;;  %s1835_s24 = sphi %s1904_s24, %s2742_s24  }
   0x9   : > { %s39_s9 = sadd.s32 1, %s1851_s28  ;;  %s72_s10 = sadd.s32 1, %s1843_s26 }
   0xa   : > { %p41_p0 = scmp.ge.s32.totalorder %s39_s9, 2  ;;  %p79_p1 = scmp.ne.s32.totalorder %s1843_s26, %s1839_s25 }
   0xb   : > { %p80_p2 = scmp.eq.s32.totalorder %s1855_s29, 0  ;;  %p85_p3 = scmp.ne.s32.totalorder %s1839_s25, %s1835_s24 }
   0xc   : > { %s2748_s9 = smov (%p41_p0, %s39_s9), 0  ;;  %p86_p5 = scmp.eq.s32.totalorder %s1443_s30, 0 }
   0xd   : > { %p1945_p4 = por %p80_p2, %p79_p1  ;;  %s69_s12 = ssub.s32 %s1851_s28, %s2748_s9 }
   0xe   : > { %p205_p6 = scmp.eq.s32.totalorder %s1443_s30, 1  ;;  %p70_p7 = scmp.eq.s32.totalorder %s69_s12, 0 }
   0xf   : > { %p1951_p8 = por %p86_p5, %p85_p3  ;;  %p211_p10 = scmp.eq.s32.totalorder %s1444_s8, 1 }
  0x10   : > { %p1955_p9 = por %p205_p6, %p79_p1  ;;  %p1585_p13 = scmp.lt.s32.totalorder %s1855_s29, 2 }
  0x11   : > { %s1960_s15 = scalar_select %p70_p7, %s1843_s26, %s72_s10  }
  0x12   : > { %s2734_s14 = scalar_select %p1955_p9, 1, 0 }
  0x13   : > { %p1962_p11 = por %p211_p10, %p85_p3  ;;  %s285_s17 = sand.u32 1, %s1843_s26  }
  0x14   : > { %s1449_s18 = sshll.u32 %s285_s17, 8  ;;  %s1477_s19 = sshll.u32 %s1851_s28, 12 }
  0x15   : > { %s2735_s16 = scalar_select %p1962_p11, 1, 0 }
  0x16   : > { %s1973_s22 = scalar_lea.hbm %s2723_s1, %s1477_s19  ;;  %s289_s23 = scalar_lea.vmem [#allocation3], %s1449_s18 }
  0x17   : > { %s296_s30 = sshll.u32 %s289_s23, 4  ;;  %p1979_p0 = pnand %p1585_p13, %p1945_p4  ;;  %s1975_s30 = int_to_ptr.vmem [resolvable:$true] %s296_s30 }
  0x18   : > { %s1984_s10 = scalar_lea.sflag [#allocation4], %s285_s17  ;;  %s1711_s12 = scalar_lea.hbm %s1973_s22, 4096 }
  0x19   : > { %p1712_p2 = scmp.ne.s32.totalorder %s1973_s22, %s1711_s12  ;;  %p1713_p3 = pneg %p1979_p0 }
  0x1a   : > { %s1716_s11 = scalar_lea.hbm %s2723_s1, 8192  ;;  %p1717_p4 = scmp.lt.u32.totalorder %s1973_s22, %s2723_s1 }
  0x1b   : > { %p1714_p5 = pnand %p1713_p3, %p1712_p2  ;;  %p1718_p7 = scmp.lt.u32.totalorder %s1716_s11, %s1711_s12 }
  0x1c   : > { %p1720_p13 = scmp.lt.u32.totalorder %s1711_s12, %s1973_s22 }
  0x1d   : > { %p1715_p6 = pneg %p1714_p5  ;;  %p1719_p10 = por %p1718_p7, %p1717_p4 }
  0x1f   : > { %p1721_p12 = por %p1720_p13, %p1719_p10 }
  0x21   : > { %p1722_p1 = pnand %p1721_p12, %p1715_p6 }
  0x23   : > { %1725 = shalt.err (!%p1722_p1)
}
  0x24   : > { %s1726_s17 = scalar_lea.vmem %s1975_s30, 4096  ;;  %s1857_s23 = smov [#allocation3]  }
  0x25   : > { %p1727_p2 = scmp.ne.s32.totalorder %s1975_s30, %s1726_s17  ;;  %s1731_s18 = sshll.u32 %s1857_s23, 4  ;;  %s1732_s18 = int_to_ptr.vmem [resolvable:$false] %s1731_s18 }
  0x26   : > { %s1733_s19 = scalar_lea.vmem %s1732_s18, 8192  ;;  %p1734_p9 = scmp.lt.s32.totalorder %s1975_s30, %s1732_s18 }
  0x27   : > { %p1729_p5 = pnand %p1727_p2, %p1713_p3  ;;  %p1735_p4 = scmp.lt.s32.totalorder %s1733_s19, %s1726_s17 }
  0x29   : > { %p1730_p11 = pneg %p1729_p5  ;;  %p1736_p7 = por %p1735_p4, %p1734_p9 }
  0x2b   : > { %p1737_p10 = pnand %p1736_p7, %p1730_p11 }
  0x2d   : > { %1740 = shalt.err (!%p1737_p10)
}
  0x2e   : > { %s1858_s12 = smov 128   ;;  %s1859_s11 = smov 8  }
  0x2f   : > { %1577 = dma.hbm_to_vmem [thread:$0]  (!%p1979_p0), %s1973_s22, 4096, %s1975_s30, %s1984_s10, %s1858_s12, %s1858_s12, %s1859_s11  }
  0x30   : > { %p304_p12 = scmp.lt.s32.totalorder %s1855_s29, 3  ;;  %p2737_p1 = scmp.ge.s32.totalorder %s1855_s29, 1 }
  0x32   : > { %p305_p3 = pnand %p2737_p1, %p304_p12 }
  0x33   : > { %s2016_s20 = sand.u32 (!%p305_p3), 1, %s1839_s25  }
  0x34   : > { %308 = sbr.rel (%p305_p3) target bundleno = 677 (0x2a5), region = 44  ;;  %s2019_s21 = sshll.u32 (!%p305_p3), %s2016_s20, 8 }
  0x35   : > { %s311_s17 = scalar_lea.sflag (!%p305_p3), [#allocation4], %s2016_s20  ;;  %s2023_s23 = scalar_lea.vmem (!%p305_p3), [#allocation3], %s2019_s21 }
  0x3b   : > { %1822 = dma.done.wait (%p1951_p8), %s311_s17, 4096  }
  0x3c   : > { %1824 = vsyncadd (%p1951_p8), %s311_s17, 4294963200  ;;  %s1456_s22 = sshll.u32 %s1847_s27, 5  ;;  %v415_v1 = vld [vmem:[%s2023_s23] sm:$0xff]  ;;  %v416_v6 = vld [vmem:[%s2023_s23 + $0x8] sm:$0xff]  ;;  %s2052_s13 = scalar_lea.vmem [#allocation7], %s2019_s21 }
  0x3d   : > { %p363_p9 = scmp.lt.s32.totalorder %s1456_s22, 63  ;;  %v431_v4 = vld [vmem:[%s2023_s23 + $0x80] sm:$0xff]  ;;  %v432_v10 = vld [vmem:[%s2023_s23 + $0x88] sm:$0xff]  ;;  %v417_v13 = vld [vmem:[%s2023_s23 + $0x10] sm:$0xff]  ;;  %s2731_s19 = sshll.u32 %s1847_s27, 12 }
  0x3e   : > { %v418_v15 = vld [vmem:[%s2023_s23 + $0x18] sm:$0xff]  ;;  %v433_v19 = vld [vmem:[%s2023_s23 + $0x90] sm:$0xff]  ;;  %v419_v24 = vld [vmem:[%s2023_s23 + $0x20] sm:$0xff]  ;;  %s2558_s17 = scalar_lea.hbm %s2729_s7, %s2731_s19  ;;  %p2738_p11 = scmp.ne.s32.totalorder %s2734_s14, 0 }
  0x3f   : > { %s2750_s22 = smov (!%p363_p9, %s1456_s22), 63  ;;  %v434_v22 = vld [vmem:[%s2023_s23 + $0x98] sm:$0xff]  ;;  %v420_v28 = vld [vmem:[%s2023_s23 + $0x28] sm:$0xff]  ;;  %v435_v31 = vld [vmem:[%s2023_s23 + $0xa0] sm:$0xff]  ;;  %s1860_s8 = smov [#allocation7]  }
  0x40   : > { %s1457_s30 = sshll.u32 %s2750_s22, 3  ;;  %v436_v33 = vld [vmem:[%s2023_s23 + $0xa8] sm:$0xff]  ;;  %v421_v37 = vld [vmem:[%s2023_s23 + $0x30] sm:$0xff]  ;;  %v422_v40 = vld [vmem:[%s2023_s23 + $0x38] sm:$0xff]  ;;  %s1259_s22 = scalar_lea.sflag [#allocation8], %s2016_s20 }
  0x41   : > { %s2033_s18 = scalar_lea.vmem %s2722_s0, %s1457_s30  ;;  %v437_v42 = vld [vmem:[%s2023_s23 + $0xb0] sm:$0xff]  ;;  %v438_v46 = vld [vmem:[%s2023_s23 + $0xb8] sm:$0xff]  ;;  %v423_v49 = vld [vmem:[%s2023_s23 + $0x40] sm:$0xff]  ;;  %s1745_s10 = sshll.u32 %s1860_s8, 4  ;;  %s1746_s10 = int_to_ptr.vmem [resolvable:$false] %s1745_s10 }
  0x42   : > { %v383_v0 = vld [vmem:[%s2033_s18] sm:$0xff]  ;;  %v384_v5 = vld [vmem:[%s2033_s18 + $0x8] sm:$0xff]  ;;  %v385_v11 = vld [vmem:[%s2033_s18 + $0x10] sm:$0xff] }
  0x43   : > { %v399_v2 = vld [vmem:[%s2033_s18 + $0x80] sm:$0xff]  ;;  %v2038_v3 = vadd.f32 %v415_v1, %v383_v0  ;;  %v2045_v8 = vadd.f32 %v416_v6, %v384_v5  ;;  %v400_v9 = vld [vmem:[%s2033_s18 + $0x88] sm:$0xff]  ;;  %v386_v14 = vld [vmem:[%s2033_s18 + $0x18] sm:$0xff]  ;;  %v2066_v16 = vadd.f32 %v417_v13, %v385_v11 }
  0x44   : > { %v2043_v7 = vadd.f32 %v431_v4, %v399_v2  ;;  %v2056_v12 = vadd.f32 %v432_v10, %v400_v9  ;;  %v2068_v17 = vadd.f32 %v418_v15, %v386_v14  ;;  %v401_v18 = vld [vmem:[%s2033_s18 + $0x90] sm:$0xff]  ;;  %v402_v20 = vld [vmem:[%s2033_s18 + $0x98] sm:$0xff]  ;;  %v387_v23 = vld [vmem:[%s2033_s18 + $0x20] sm:$0xff] }
  0x45   : > { %511 = vadd.xlane.f32.xlu0 %v2038_v3  ;;  %479 = vst [vmem:[%s2052_s13] sm:$0xff] %v2038_v3  ;;  %480 = vst [vmem:[%s2052_s13 + $0x8] sm:$0xff] %v2045_v8  ;;  %v2075_v21 = vadd.f32 %v433_v19, %v401_v18  ;;  %v2084_v25 = vadd.f32 %v434_v22, %v402_v20  ;;  %v2086_v26 = vadd.f32 %v419_v24, %v387_v23  ;;  %v388_v27 = vld [vmem:[%s2033_s18 + $0x28] sm:$0xff]  ;;  %v403_v29 = vld [vmem:[%s2033_s18 + $0xa0] sm:$0xff] }
  0x46   : > { %543 = vadd.xlane.f32.xlu1 %v2043_v7  ;;  %495 = vst [vmem:[%s2052_s13 + $0x80] sm:$0xff] %v2043_v7  ;;  %496 = vst [vmem:[%s2052_s13 + $0x88] sm:$0xff] %v2056_v12  ;;  %v2094_v30 = vadd.f32 %v420_v28, %v388_v27  ;;  %v404_v32 = vld [vmem:[%s2033_s18 + $0xa8] sm:$0xff]  ;;  %v2104_v34 = vadd.f32 %v435_v31, %v403_v29  ;;  %v389_v36 = vld [vmem:[%s2033_s18 + $0x30] sm:$0xff] }
  0x47   : > { %481 = vst [vmem:[%s2052_s13 + $0x10] sm:$0xff] %v2066_v16  ;;  %482 = vst [vmem:[%s2052_s13 + $0x18] sm:$0xff] %v2068_v17  ;;  %v2106_v35 = vadd.f32 %v436_v33, %v404_v32  ;;  %v390_v38 = vld [vmem:[%s2033_s18 + $0x38] sm:$0xff]  ;;  %v2113_v39 = vadd.f32 %v421_v37, %v389_v36  ;;  %v405_v41 = vld [vmem:[%s2033_s18 + $0xb0] sm:$0xff] }
  0x48   : > { %497 = vst [vmem:[%s2052_s13 + $0x90] sm:$0xff] %v2075_v21  ;;  %498 = vst [vmem:[%s2052_s13 + $0x98] sm:$0xff] %v2084_v25  ;;  %v2122_v43 = vadd.f32 %v422_v40, %v390_v38  ;;  %v2124_v44 = vadd.f32 %v437_v42, %v405_v41  ;;  %v406_v45 = vld [vmem:[%s2033_s18 + $0xb8] sm:$0xff]  ;;  %v391_v47 = vld [vmem:[%s2033_s18 + $0x40] sm:$0xff] }
  0x49   : > { %513 = vadd.xlane.f32.xlu0 %v2045_v8  ;;  %483 = vst [vmem:[%s2052_s13 + $0x20] sm:$0xff] %v2086_v26  ;;  %484 = vst [vmem:[%s2052_s13 + $0x28] sm:$0xff] %v2094_v30  ;;  %v2132_v48 = vadd.f32 %v438_v46, %v406_v45  ;;  %v392_v50 = vld [vmem:[%s2033_s18 + $0x48] sm:$0xff]  ;;  %v2142_v52 = vadd.f32 %v423_v49, %v391_v47  ;;  %v407_v54 = vld [vmem:[%s2033_s18 + $0xc0] sm:$0xff] }
  0x4a   : > { %545 = vadd.xlane.f32.xlu1 %v2056_v12  ;;  %499 = vst [vmem:[%s2052_s13 + $0xa0] sm:$0xff] %v2104_v34  ;;  %500 = vst [vmem:[%s2052_s13 + $0xa8] sm:$0xff] %v2106_v35  ;;  %v424_v51 = vld [vmem:[%s2023_s23 + $0x48] sm:$0xff]  ;;  %v439_v55 = vld [vmem:[%s2023_s23 + $0xc0] sm:$0xff] }
  0x4b   : > { %485 = vst [vmem:[%s2052_s13 + $0x30] sm:$0xff] %v2113_v39  ;;  %486 = vst [vmem:[%s2052_s13 + $0x38] sm:$0xff] %v2122_v43  ;;  %v2144_v53 = vadd.f32 %v424_v51, %v392_v50  ;;  %v408_v56 = vld [vmem:[%s2033_s18 + $0xc8] sm:$0xff]  ;;  %v2151_v57 = vadd.f32 %v439_v55, %v407_v54  ;;  %v393_v59 = vld [vmem:[%s2033_s18 + $0x50] sm:$0xff] }
  0x4c   : > { %501 = vst [vmem:[%s2052_s13 + $0xb0] sm:$0xff] %v2124_v44  ;;  %502 = vst [vmem:[%s2052_s13 + $0xb8] sm:$0xff] %v2132_v48  ;;  %v440_v58 = vld [vmem:[%s2023_s23 + $0xc8] sm:$0xff]  ;;  %v425_v60 = vld [vmem:[%s2023_s23 + $0x50] sm:$0xff] }
  0x4d   : > { %515 = vadd.xlane.f32.xlu0 %v2066_v16  ;;  %487 = vst [vmem:[%s2052_s13 + $0x40] sm:$0xff] %v2142_v52  ;;  %488 = vst [vmem:[%s2052_s13 + $0x48] sm:$0xff] %v2144_v53  ;;  %v2160_v61 = vadd.f32 %v440_v58, %v408_v56  ;;  %v2162_v62 = vadd.f32 %v425_v60, %v393_v59  ;;  %v394_v63 = vld [vmem:[%s2033_s18 + $0x58] sm:$0xff]  ;;  %v409_v1 = vld [vmem:[%s2033_s18 + $0xd0] sm:$0xff] }
  0x4e   : > { %517 = vadd.xlane.f32.xlu1 %v2068_v17  ;;  %v426_v0 = vld [vmem:[%s2023_s23 + $0x58] sm:$0xff]  ;;  %503 = vst [vmem:[%s2052_s13 + $0xc0] sm:$0xff] %v2151_v57  ;;  %v441_v4 = vld [vmem:[%s2023_s23 + $0xd0] sm:$0xff]  ;;  %v395_v11 = vld [vmem:[%s2033_s18 + $0x60] sm:$0xff] }
  0x4f   : > { %v2170_v2 = vadd.f32 %v426_v0, %v394_v63  ;;  %v410_v5 = vld [vmem:[%s2033_s18 + $0xd8] sm:$0xff]  ;;  %504 = vst [vmem:[%s2052_s13 + $0xc8] sm:$0xff] %v2160_v61  ;;  %489 = vst [vmem:[%s2052_s13 + $0x50] sm:$0xff] %v2162_v62  ;;  %v2180_v9 = vadd.f32 %v441_v4, %v409_v1  ;;  %v427_v13 = vld [vmem:[%s2023_s23 + $0x60] sm:$0xff] }
  0x50   : > { %v442_v6 = vld [vmem:[%s2023_s23 + $0xd8] sm:$0xff]  ;;  %v396_v14 = vld [vmem:[%s2033_s18 + $0x68] sm:$0xff]  ;;  %v2189_v15 = vadd.f32 %v427_v13, %v395_v11  ;;  %v411_v19 = vld [vmem:[%s2033_s18 + $0xe0] sm:$0xff] }
  0x51   : > { %547 = vadd.xlane.f32.xlu0 %v2075_v21  ;;  %v2182_v10 = vadd.f32 %v442_v6, %v410_v5  ;;  %490 = vst [vmem:[%s2052_s13 + $0x58] sm:$0xff] %v2170_v2  ;;  %v428_v18 = vld [vmem:[%s2023_s23 + $0x68] sm:$0xff]  ;;  %v443_v20 = vld [vmem:[%s2023_s23 + $0xe0] sm:$0xff]  ;;  %505 = vst [vmem:[%s2052_s13 + $0xd0] sm:$0xff] %v2180_v9 }
  0x52   : > { %549 = vadd.xlane.f32.xlu1 %v2084_v25  ;;  %v2198_v22 = vadd.f32 %v428_v18, %v396_v14  ;;  %v2200_v23 = vadd.f32 %v443_v20, %v411_v19  ;;  %v412_v24 = vld [vmem:[%s2033_s18 + $0xe8] sm:$0xff]  ;;  %v397_v28 = vld [vmem:[%s2033_s18 + $0x70] sm:$0xff]  ;;  %491 = vst [vmem:[%s2052_s13 + $0x60] sm:$0xff] %v2189_v15  ;;  %v398_v32 = vld [vmem:[%s2033_s18 + $0x78] sm:$0xff] }
  0x53   : > { %506 = vst [vmem:[%s2052_s13 + $0xd8] sm:$0xff] %v2182_v10  ;;  %v444_v27 = vld [vmem:[%s2023_s23 + $0xe8] sm:$0xff]  ;;  %v429_v31 = vld [vmem:[%s2023_s23 + $0x70] sm:$0xff]  ;;  %v430_v33 = vld [vmem:[%s2023_s23 + $0x78] sm:$0xff] }
  0x54   : > { %v2208_v29 = vadd.f32 %v444_v27, %v412_v24  ;;  %492 = vst [vmem:[%s2052_s13 + $0x68] sm:$0xff] %v2198_v22  ;;  %507 = vst [vmem:[%s2052_s13 + $0xe0] sm:$0xff] %v2200_v23  ;;  %v2218_v36 = vadd.f32 %v429_v31, %v397_v28  ;;  %v2220_v37 = vadd.f32 %v430_v33, %v398_v32  ;;  %v413_v38 = vld [vmem:[%s2033_s18 + $0xf0] sm:$0xff]  ;;  %v414_v41 = vld [vmem:[%s2033_s18 + $0xf8] sm:$0xff]  ;;  %s1747_s18 = scalar_lea.vmem %s1746_s10, 8192 }
  0x55   : > { %519 = vadd.xlane.f32.xlu0 %v2086_v26  ;;  %v445_v40 = vld [vmem:[%s2023_s23 + $0xf0] sm:$0xff]  ;;  %v446_v45 = vld [vmem:[%s2023_s23 + $0xf8] sm:$0xff]  ;;  %s1289_s23 = sshll.u32 %s2052_s13, 4  ;;  %s2561_s23 = int_to_ptr.vmem [resolvable:$true] %s1289_s23 }
  0x56   : > { %521 = vadd.xlane.f32.xlu1 %v2094_v30  ;;  %508 = vst [vmem:[%s2052_s13 + $0xe8] sm:$0xff] %v2208_v29  ;;  %v2227_v42 = vadd.f32 %v445_v40, %v413_v38  ;;  %493 = vst [vmem:[%s2052_s13 + $0x70] sm:$0xff] %v2218_v36  ;;  %v2234_v46 = vadd.f32 %v446_v45, %v414_v41  ;;  %s1741_s30 = scalar_lea.vmem %s2561_s23, 4096  ;;  %p1748_p13 = scmp.lt.s32.totalorder %s2561_s23, %s1746_s10 }
  0x57   : > { %494 = vst [vmem:[%s2052_s13 + $0x78] sm:$0xff] %v2220_v37  ;;  %p1742_p8 = scmp.ne.s32.totalorder %s2561_s23, %s1741_s30  ;;  %p1749_p2 = scmp.lt.s32.totalorder %s1747_s18, %s1741_s30 }
  0x58   : > { %509 = vst [vmem:[%s2052_s13 + $0xf0] sm:$0xff] %v2227_v42  ;;  %510 = vst [vmem:[%s2052_s13 + $0xf8] sm:$0xff] %v2234_v46 }
  0x59   : > { %551 = vadd.xlane.f32.xlu0 %v2104_v34  ;;  %p1743_p0 = pnand %p1742_p8, %p2738_p11  ;;  %p1750_p5 = por %p1749_p2, %p1748_p13 }
  0x5a   : > { %553 = vadd.xlane.f32.xlu1 %v2106_v35 }
  0x5b   : > { %p1744_p6 = pneg %p1743_p0 }
  0x5d   : > { %523 = vadd.xlane.f32.xlu0 %v2113_v39  ;;  %p1751_p4 = pnand %p1750_p5, %p1744_p6 }
  0x5e   : > { %525 = vadd.xlane.f32.xlu1 %v2122_v43 }
  0x61   : > { %555 = vadd.xlane.f32.xlu0 %v2124_v44 }
  0x62   : > { %557 = vadd.xlane.f32.xlu1 %v2132_v48 }
  0x65   : > { %527 = vadd.xlane.f32.xlu0 %v2142_v52 }
  0x66   : > { %529 = vadd.xlane.f32.xlu1 %v2144_v53 }
  0x69   : > { %559 = vadd.xlane.f32.xlu0 %v2151_v57 }
  0x6a   : > { %561 = vadd.xlane.f32.xlu1 %v2160_v61 }
  0x6d   : > { %531 = vadd.xlane.f32.xlu0 %v2162_v62 }
  0x6e   : > { %533 = vadd.xlane.f32.xlu1 %v2170_v2 }
  0x71   : > { %563 = vadd.xlane.f32.xlu0 %v2180_v9 }
  0x72   : > { %565 = vadd.xlane.f32.xlu1 %v2182_v10 }
  0x75   : > { %535 = vadd.xlane.f32.xlu0 %v2189_v15 }
  0x76   : > { %537 = vadd.xlane.f32.xlu1 %v2198_v22 }
  0x79   : > { %567 = vadd.xlane.f32.xlu0 %v2200_v23 }
  0x7a   : > { %569 = vadd.xlane.f32.xlu1 %v2208_v29 }
  0x7d   : > { %539 = vadd.xlane.f32.xlu0 %v2218_v36 }
  0x7e   : > { %541 = vadd.xlane.f32.xlu1 %v2220_v37 }
  0x81   : > { %571 = vadd.xlane.f32.xlu0 %v2227_v42 }
  0x82   : > { %573 = vadd.xlane.f32.xlu1 %v2234_v46 }
  0xd2   : > { %v512_v47 = vpop.xlane.xlu0 %511 }
  0xd3   : > { %v575_v49 = vmul.f32 0.0078125, %v512_v47  ;;  %v544_v50 = vpop.xlane.xlu1 %543 }
  0xd4   : > { %v591_v51 = vmul.f32 0.0078125, %v544_v50 }
  0xd5   : > { %v2263_v54 = vsub.f32 %v2038_v3, %v575_v49 }
  0xd6   : > { %v2266_v55 = vsub.f32 %v2043_v7, %v591_v51  ;;  %v514_v56 = vpop.xlane.xlu0 %513 }
  0xd7   : > { %v576_v58 = vmul.f32 0.0078125, %v514_v56  ;;  %v639_v59 = vmul.f32 %v2263_v54, %v2263_v54  ;;  %v546_v60 = vpop.xlane.xlu1 %545 }
  0xd8   : > { %v592_v63 = vmul.f32 0.0078125, %v546_v60  ;;  %v655_v1 = vmul.f32 %v2266_v55, %v2266_v55 }
  0xd9   : > { %v2271_v0 = vsub.f32 %v2045_v8, %v576_v58  ;;  %671 = vadd.xlane.f32.xlu0 %v639_v59 }
  0xda   : > { %v2276_v3 = vsub.f32 %v2056_v12, %v592_v63  ;;  %v516_v4 = vpop.xlane.xlu0 %515 }
  0xdb   : > { %v577_v7 = vmul.f32 0.0078125, %v516_v4  ;;  %v640_v5 = vmul.f32 %v2271_v0, %v2271_v0  ;;  %v518_v6 = vpop.xlane.xlu1 %517  ;;  %v1640_v4 = vld [vmem:[%s2726_s4 + $0x8] sm:$0xff]  }
  0xdc   : > { %v578_v11 = vmul.f32 0.0078125, %v518_v6  ;;  %v656_v8 = vmul.f32 %v2276_v3, %v2276_v3 }
  0xdd   : > { %v2281_v13 = vsub.f32 %v2066_v16, %v577_v7  ;;  %703 = vadd.xlane.f32.xlu0 %v655_v1  ;;  %673 = vadd.xlane.f32.xlu1 %v640_v5 }
  0xde   : > { %v2286_v14 = vsub.f32 %v2068_v17, %v578_v11  ;;  %v548_v12 = vpop.xlane.xlu0 %547 }
  0xdf   : > { %v593_v18 = vmul.f32 0.0078125, %v548_v12  ;;  %v641_v19 = vmul.f32 %v2281_v13, %v2281_v13  ;;  %v550_v20 = vpop.xlane.xlu1 %549 }
  0xe0   : > { %v594_v24 = vmul.f32 0.0078125, %v550_v20  ;;  %v642_v16 = vmul.f32 %v2286_v14, %v2286_v14 }
  0xe1   : > { %v2291_v27 = vsub.f32 %v2075_v21, %v593_v18  ;;  %705 = vadd.xlane.f32.xlu1 %v656_v8  ;;  %675 = vadd.xlane.f32.xlu0 %v641_v19  ;;  %v1641_v18 = vld [vmem:[%s2726_s4 + $0x10] sm:$0xff]  }
  0xe2   : > { %v2296_v28 = vsub.f32 %v2084_v25, %v594_v24  ;;  %v520_v17 = vpop.xlane.xlu0 %519 }
  0xe3   : > { %v579_v31 = vmul.f32 0.0078125, %v520_v17  ;;  %v657_v32 = vmul.f32 %v2291_v27, %v2291_v27  ;;  %v522_v33 = vpop.xlane.xlu1 %521 }
  0xe4   : > { %v580_v38 = vmul.f32 0.0078125, %v522_v33  ;;  %v658_v21 = vmul.f32 %v2296_v28, %v2296_v28 }
  0xe5   : > { %v2301_v40 = vsub.f32 %v2086_v26, %v579_v31  ;;  %677 = vadd.xlane.f32.xlu1 %v642_v16  ;;  %707 = vadd.xlane.f32.xlu0 %v657_v32  ;;  %v1639_v26 = vld [vmem:[%s2726_s4] sm:$0xff]   ;;  %v1642_v32 = vld [vmem:[%s2726_s4 + $0x18] sm:$0xff]  }
  0xe6   : > { %v2306_v41 = vsub.f32 %v2094_v30, %v580_v38  ;;  %v552_v25 = vpop.xlane.xlu0 %551  ;;  %1504 = vmatprep.subr.bf16.mxu0 %v1639_v26  ;;  %1552 = vmatprep.subr.bf16.mxu1 %v1639_v26 }
  0xe7   : > { %v595_v45 = vmul.f32 0.0078125, %v552_v25  ;;  %v643_v47 = vmul.f32 %v2301_v40, %v2301_v40  ;;  %v554_v49 = vpop.xlane.xlu1 %553  ;;  %1505 = vmatpush3.bf16.msra.mxu0 %v1639_v26  ;;  %1560 = vmatpush3.bf16.msra.mxu1 %v1639_v26 }
  0xe8   : > { %v596_v50 = vmul.f32 0.0078125, %v554_v49  ;;  %v644_v30 = vmul.f32 %v2306_v41, %v2306_v41  ;;  %1506 = vmatprep.subr.bf16.mxu0 %v1640_v4  ;;  %1553 = vmatprep.subr.bf16.mxu1 %v1640_v4  ;;  %v1643_v49 = vld [vmem:[%s2726_s4 + $0x20] sm:$0xff]  }
  0xe9   : > { %v2314_v51 = vsub.f32 %v2104_v34, %v595_v45  ;;  %709 = vadd.xlane.f32.xlu1 %v658_v21  ;;  %679 = vadd.xlane.f32.xlu0 %v643_v47 }
  0xea   : > { %v2319_v56 = vsub.f32 %v2106_v35, %v596_v50  ;;  %v524_v58 = vpop.xlane.xlu0 %523 }
  0xeb   : > { %v581_v59 = vmul.f32 0.0078125, %v524_v58  ;;  %v659_v60 = vmul.f32 %v2314_v51, %v2314_v51  ;;  %v526_v63 = vpop.xlane.xlu1 %525  ;;  %1507 = vmatpush3.bf16.msra.mxu0 %v1640_v4  ;;  %1561 = vmatpush3.bf16.msra.mxu1 %v1640_v4 }
  0xec   : > { %v582_v34 = vmul.f32 0.0078125, %v526_v63  ;;  %v660_v35 = vmul.f32 %v2319_v56, %v2319_v56  ;;  %1508 = vmatprep.subr.bf16.mxu0 %v1641_v18  ;;  %1554 = vmatprep.subr.bf16.mxu1 %v1641_v18  ;;  %v1644_v63 = vld [vmem:[%s2726_s4 + $0x28] sm:$0xff]  }
  0xed   : > { %v2324_v1 = vsub.f32 %v2113_v39, %v581_v59  ;;  %681 = vadd.xlane.f32.xlu1 %v644_v30  ;;  %711 = vadd.xlane.f32.xlu0 %v659_v60 }
  0xee   : > { %v2332_v7 = vsub.f32 %v2122_v43, %v582_v34  ;;  %v556_v5 = vpop.xlane.xlu0 %555 }
  0xef   : > { %v597_v6 = vmul.f32 0.0078125, %v556_v5  ;;  %v645_v11 = vmul.f32 %v2324_v1, %v2324_v1  ;;  %v558_v8 = vpop.xlane.xlu1 %557  ;;  %1509 = vmatpush3.bf16.msra.mxu0 %v1641_v18  ;;  %1562 = vmatpush3.bf16.msra.mxu1 %v1641_v18 }
  0xf0   : > { %v598_v39 = vmul.f32 0.0078125, %v558_v8  ;;  %v646_v43 = vmul.f32 %v2332_v7, %v2332_v7  ;;  %1510 = vmatprep.subr.bf16.mxu0 %v1642_v32  ;;  %1555 = vmatprep.subr.bf16.mxu1 %v1642_v32  ;;  %v1645_v8 = vld [vmem:[%s2726_s4 + $0x30] sm:$0xff]  }
  0xf1   : > { %v2337_v12 = vsub.f32 %v2124_v44, %v597_v6  ;;  %713 = vadd.xlane.f32.xlu1 %v660_v35  ;;  %683 = vadd.xlane.f32.xlu0 %v645_v11 }
  0xf2   : > { %v2345_v19 = vsub.f32 %v2132_v48, %v598_v39  ;;  %v528_v20 = vpop.xlane.xlu0 %527 }
  0xf3   : > { %v583_v24 = vmul.f32 0.0078125, %v528_v20  ;;  %v661_v16 = vmul.f32 %v2337_v12, %v2337_v12  ;;  %v530_v17 = vpop.xlane.xlu1 %529  ;;  %1511 = vmatpush3.bf16.msra.mxu0 %v1642_v32  ;;  %1563 = vmatpush3.bf16.msra.mxu1 %v1642_v32 }
  0xf4   : > { %v584_v44 = vmul.f32 0.0078125, %v530_v17  ;;  %v662_v48 = vmul.f32 %v2345_v19, %v2345_v19  ;;  %1512 = vmatprep.subr.bf16.mxu0 %v1643_v49  ;;  %1556 = vmatprep.subr.bf16.mxu1 %v1643_v49  ;;  %v1646_v17 = vld [vmem:[%s2726_s4 + $0x38] sm:$0xff]  }
  0xf5   : > { %v2350_v31 = vsub.f32 %v2142_v52, %v583_v24  ;;  %685 = vadd.xlane.f32.xlu1 %v646_v43  ;;  %715 = vadd.xlane.f32.xlu0 %v661_v16 }
  0xf6   : > { %v2358_v33 = vsub.f32 %v2144_v53, %v584_v44  ;;  %v560_v38 = vpop.xlane.xlu0 %559 }
  0xf7   : > { %v599_v21 = vmul.f32 0.0078125, %v560_v38  ;;  %v647_v25 = vmul.f32 %v2350_v31, %v2350_v31  ;;  %v562_v45 = vpop.xlane.xlu1 %561  ;;  %1513 = vmatpush3.bf16.msra.mxu0 %v1643_v49  ;;  %1564 = vmatpush3.bf16.msra.mxu1 %v1643_v49 }
  0xf8   : > { %v600_v52 = vmul.f32 0.0078125, %v562_v45  ;;  %v648_v53 = vmul.f32 %v2358_v33, %v2358_v33  ;;  %1514 = vmatprep.subr.bf16.mxu0 %v1644_v63  ;;  %1557 = vmatprep.subr.bf16.mxu1 %v1644_v63 }
  0xf9   : > { %v2363_v47 = vsub.f32 %v2151_v57, %v599_v21  ;;  %717 = vadd.xlane.f32.xlu1 %v662_v48  ;;  %687 = vadd.xlane.f32.xlu0 %v647_v25 }
  0xfa   : > { %v2371_v50 = vsub.f32 %v2160_v61, %v600_v52  ;;  %v532_v26 = vpop.xlane.xlu0 %531 }
  0xfb   : > { %v585_v30 = vmul.f32 0.0078125, %v532_v26  ;;  %v663_v58 = vmul.f32 %v2363_v47, %v2363_v47  ;;  %v534_v59 = vpop.xlane.xlu1 %533  ;;  %1515 = vmatpush3.bf16.msra.mxu0 %v1644_v63  ;;  %1565 = vmatpush3.bf16.msra.mxu1 %v1644_v63 }
  0xfc   : > { %v586_v57 = vmul.f32 0.0078125, %v534_v59  ;;  %v664_v61 = vmul.f32 %v2371_v50, %v2371_v50  ;;  %1516 = vmatprep.subr.bf16.mxu0 %v1645_v8  ;;  %1558 = vmatprep.subr.bf16.mxu1 %v1645_v8 }
  0xfd   : > { %v2376_v60 = vsub.f32 %v2162_v62, %v585_v30  ;;  %689 = vadd.xlane.f32.xlu1 %v648_v53  ;;  %719 = vadd.xlane.f32.xlu0 %v663_v58 }
  0xfe   : > { %v2384_v34 = vsub.f32 %v2170_v2, %v586_v57  ;;  %v564_v35 = vpop.xlane.xlu0 %563 }
  0xff   : > { %v601_v4 = vmul.f32 0.0078125, %v564_v35  ;;  %v649_v5 = vmul.f32 %v2376_v60, %v2376_v60  ;;  %v566_v6 = vpop.xlane.xlu1 %565  ;;  %1517 = vmatpush3.bf16.msra.mxu0 %v1645_v8  ;;  %1566 = vmatpush3.bf16.msra.mxu1 %v1645_v8 }
 0x100   : > { %v602_v62 = vmul.f32 0.0078125, %v566_v6  ;;  %v650_v2 = vmul.f32 %v2384_v34, %v2384_v34  ;;  %1518 = vmatprep.subr.bf16.mxu0 %v1646_v17  ;;  %1559 = vmatprep.subr.bf16.mxu1 %v1646_v17 }
 0x101   : > { %v2389_v11 = vsub.f32 %v2180_v9, %v601_v4  ;;  %721 = vadd.xlane.f32.xlu1 %v664_v61  ;;  %691 = vadd.xlane.f32.xlu0 %v649_v5 }
 0x102   : > { %v2397_v39 = vsub.f32 %v2182_v10, %v602_v62  ;;  %v536_v43 = vpop.xlane.xlu0 %535 }
 0x103   : > { %v587_v18 = vmul.f32 0.0078125, %v536_v43  ;;  %v665_v20 = vmul.f32 %v2389_v11, %v2389_v11  ;;  %v538_v24 = vpop.xlane.xlu1 %537  ;;  %1519 = vmatpush3.bf16.msra.mxu0 %v1646_v17  ;;  %1567 = vmatpush3.bf16.msra.mxu1 %v1646_v17 }
 0x104   : > { %v588_v9 = vmul.f32 0.0078125, %v538_v24  ;;  %v666_v10 = vmul.f32 %v2397_v39, %v2397_v39 }
 0x105   : > { %v2402_v16 = vsub.f32 %v2189_v15, %v587_v18  ;;  %693 = vadd.xlane.f32.xlu1 %v650_v2  ;;  %723 = vadd.xlane.f32.xlu0 %v665_v20 }
 0x106   : > { %v2410_v44 = vsub.f32 %v2198_v22, %v588_v9  ;;  %v568_v48 = vpop.xlane.xlu0 %567 }
 0x107   : > { %v603_v32 = vmul.f32 0.0078125, %v568_v48  ;;  %v651_v38 = vmul.f32 %v2402_v16, %v2402_v16  ;;  %v570_v21 = vpop.xlane.xlu1 %569 }
 0x108   : > { %v604_v15 = vmul.f32 0.0078125, %v570_v21  ;;  %v652_v22 = vmul.f32 %v2410_v44, %v2410_v44 }
 0x109   : > { %v2415_v25 = vsub.f32 %v2200_v23, %v603_v32  ;;  %725 = vadd.xlane.f32.xlu1 %v666_v10  ;;  %695 = vadd.xlane.f32.xlu0 %v651_v38 }
 0x10a   : > { %v2420_v45 = vsub.f32 %v2208_v29, %v604_v15  ;;  %v540_v52 = vpop.xlane.xlu0 %539 }
 0x10b   : > { %v589_v53 = vmul.f32 0.0078125, %v540_v52  ;;  %v667_v49 = vmul.f32 %v2415_v25, %v2415_v25  ;;  %v542_v26 = vpop.xlane.xlu1 %541 }
 0x10c   : > { %v590_v30 = vmul.f32 0.0078125, %v542_v26  ;;  %v668_v23 = vmul.f32 %v2420_v45, %v2420_v45 }
 0x10d   : > { %v2425_v58 = vsub.f32 %v2218_v36, %v589_v53  ;;  %697 = vadd.xlane.f32.xlu1 %v652_v22  ;;  %727 = vadd.xlane.f32.xlu0 %v667_v49 }
 0x10e   : > { %v2430_v59 = vsub.f32 %v2220_v37, %v590_v30  ;;  %v572_v29 = vpop.xlane.xlu0 %571 }
 0x10f   : > { %v605_v57 = vmul.f32 0.0078125, %v572_v29  ;;  %v653_v61 = vmul.f32 %v2425_v58, %v2425_v58  ;;  %v574_v63 = vpop.xlane.xlu1 %573 }
 0x110   : > { %v606_v35 = vmul.f32 0.0078125, %v574_v63  ;;  %v654_v36 = vmul.f32 %v2430_v59, %v2430_v59  ;;  %v2450_v63 = vld [vmem:[%s2724_s2] ss:$0 sm:$0xff] }
 0x111   : > { %v2435_v4 = vsub.f32 %v2227_v42, %v605_v57  ;;  %729 = vadd.xlane.f32.xlu1 %v668_v23  ;;  %699 = vadd.xlane.f32.xlu0 %v653_v61 }
 0x112   : > { %v2440_v5 = vsub.f32 %v2234_v46, %v606_v35 }
 0x113   : > { %v669_v37 = vmul.f32 %v2435_v4, %v2435_v4 }
 0x114   : > { %v670_v6 = vmul.f32 %v2440_v5, %v2440_v5 }
 0x115   : > { %701 = vadd.xlane.f32.xlu1 %v654_v36  ;;  %731 = vadd.xlane.f32.xlu0 %v669_v37 }
 0x119   : > { %733 = vadd.xlane.f32.xlu1 %v670_v6 }
 0x166   : > { %v672_v62 = vpop.xlane.xlu0 %671 }
 0x167   : > { %v735_v42 = vmul.f32 0.0078125, %v672_v62 }
 0x169   : > { %v767_v2 = vadd.f32 1e-05, %v735_v42 }
 0x16a   : > { %v674_v8 = vpop.xlane.xlu1 %673  ;;  %v704_v43 = vpop.xlane.xlu0 %703 }
 0x16b   : > { %1647 = vrsqrt.f32 %v767_v2  ;;  %v736_v18 = vmul.f32 0.0078125, %v674_v8  ;;  %v751_v20 = vmul.f32 0.0078125, %v704_v43 }
 0x16d   : > { %v768_v24 = vadd.f32 1e-05, %v736_v18  ;;  %v783_v46 = vadd.f32 1e-05, %v751_v20  ;;  %v2457_v18 = vld [vmem:[%s2725_s3] ss:$0 sm:$0xff] }
 0x16e   : > { %v706_v9 = vpop.xlane.xlu1 %705  ;;  %v676_v10 = vpop.xlane.xlu0 %675 }
 0x16f   : > { %1649 = vrsqrt.f32 %v768_v24  ;;  %v752_v17 = vmul.f32 0.0078125, %v706_v9  ;;  %v737_v48 = vmul.f32 0.0078125, %v676_v10 }
 0x170   : > { %1651 = vrsqrt.f32 %v783_v46 }
 0x171   : > { %v784_v32 = vadd.f32 1e-05, %v752_v17  ;;  %v769_v38 = vadd.f32 1e-05, %v737_v48 }
 0x172   : > { %v678_v21 = vpop.xlane.xlu1 %677  ;;  %v708_v15 = vpop.xlane.xlu0 %707 }
 0x173   : > { %1653 = vrsqrt.f32 %v784_v32  ;;  %v738_v22 = vmul.f32 0.0078125, %v678_v21  ;;  %v753_v52 = vmul.f32 0.0078125, %v708_v15 }
 0x174   : > { %1655 = vrsqrt.f32 %v769_v38 }
 0x175   : > { %v1648_v53 = vpop.eup %1647  ;;  %v770_v49 = vadd.f32 1e-05, %v738_v22  ;;  %v785_v26 = vadd.f32 1e-05, %v753_v52 }
 0x176   : > { %v710_v30 = vpop.xlane.xlu1 %709  ;;  %v680_v23 = vpop.xlane.xlu0 %679  ;;  %v831_v29 = vmul.f32 %v1648_v53, %v2263_v54 }
 0x177   : > { %1657 = vrsqrt.f32 %v770_v49  ;;  %v754_v57 = vmul.f32 0.0078125, %v710_v30  ;;  %v739_v61 = vmul.f32 0.0078125, %v680_v23 }
 0x178   : > { %1659 = vrsqrt.f32 %v785_v26  ;;  %v870_v8 = vmul.f32 %v2450_v63, %v831_v29 }
 0x179   : > { %v1650_v35 = vpop.eup %1649  ;;  %v786_v36 = vadd.f32 1e-05, %v754_v57  ;;  %v771_v37 = vadd.f32 1e-05, %v739_v61 }
 0x17a   : > { %v1652_v6 = vpop.eup %1651  ;;  %v682_v62 = vpop.xlane.xlu1 %681  ;;  %v832_v2 = vmul.f32 %v1650_v35, %v2271_v0  ;;  %v909_v32 = vadd.f32 %v2457_v18, %v870_v8 }
 0x17b   : > { %v712_v42 = vpop.xlane.xlu0 %711  ;;  %1661 = vrsqrt.f32 %v786_v36  ;;  %v740_v54 = vmul.f32 0.0078125, %v682_v62  ;;  %v847_v20 = vmul.f32 %v1652_v6, %v2266_v55 }
 0x17c   : > { %v755_v43 = vmul.f32 0.0078125, %v712_v42  ;;  %1663 = vrsqrt.f32 %v771_v37  ;;  %v871_v24 = vmul.f32 %v2450_v63, %v832_v2 }
 0x17d   : > { %v1654_v46 = vpop.eup %1653  ;;  %v772_v9 = vadd.f32 1e-05, %v740_v54  ;;  %v886_v15 = vmul.f32 %v2450_v63, %v847_v20 }
 0x17e   : > { %v787_v10 = vadd.f32 1e-05, %v755_v43  ;;  %v1656_v17 = vpop.eup %1655  ;;  %v714_v0 = vpop.xlane.xlu1 %713  ;;  %v910_v38 = vadd.f32 %v2457_v18, %v871_v24  ;;  %v848_v21 = vmul.f32 %v1654_v46, %v2276_v3 }
 0x17f   : > { %v684_v48 = vpop.xlane.xlu0 %683  ;;  %1665 = vrsqrt.f32 %v772_v9  ;;  %v756_v22 = vmul.f32 0.0078125, %v714_v0  ;;  %v833_v49 = vmul.f32 %v1656_v17, %v2281_v13  ;;  %v925_v3 = vadd.f32 %v2457_v18, %v886_v15 }
 0x180   : > { %v741_v55 = vmul.f32 0.0078125, %v684_v48  ;;  %1667 = vrsqrt.f32 %v787_v10  ;;  %v941_v52 = vpack.c.bf16 %v910_v38, %v909_v32  ;;  %v887_v53 = vmul.f32 %v2450_v63, %v848_v21 }
 0x181   : > { %v1658_v26 = vpop.eup %1657  ;;  %v788_v30 = vadd.f32 1e-05, %v756_v22  ;;  %v872_v37 = vmul.f32 %v2450_v63, %v833_v49 }
 0x182   : > { %v773_v23 = vadd.f32 1e-05, %v741_v55  ;;  %v1660_v29 = vpop.eup %1659  ;;  %v686_v57 = vpop.xlane.xlu1 %685  ;;  %1520 = vmatprep.mubr.bf16.mxu0 %v941_v52  ;;  %v926_v35 = vadd.f32 %v2457_v18, %v887_v53  ;;  %v834_v36 = vmul.f32 %v1658_v26, %v2286_v14 }
 0x183   : > { %v716_v61 = vpop.xlane.xlu0 %715  ;;  %1669 = vrsqrt.f32 %v788_v30  ;;  %v742_v6 = vmul.f32 0.0078125, %v686_v57  ;;  %v849_v13 = vmul.f32 %v1660_v29, %v2291_v27  ;;  %v911_v14 = vadd.f32 %v2457_v18, %v872_v37 }
 0x184   : > { %v757_v62 = vmul.f32 0.0078125, %v716_v61  ;;  %1671 = vrsqrt.f32 %v773_v23  ;;  %v949_v42 = vpack.c.bf16 %v926_v35, %v925_v3  ;;  %v873_v2 = vmul.f32 %v2450_v63, %v834_v36 }
 0x185   : > { %v1662_v8 = vpop.eup %1661  ;;  %v774_v54 = vadd.f32 1e-05, %v742_v6  ;;  %v888_v17 = vmul.f32 %v2450_v63, %v849_v13 }
 0x186   : > { %v789_v43 = vadd.f32 1e-05, %v757_v62  ;;  %v1664_v20 = vpop.eup %1663  ;;  %v718_v24 = vpop.xlane.xlu1 %717  ;;  %1536 = vmatprep.mubr.bf16.mxu1 %v949_v42  ;;  %v912_v9 = vadd.f32 %v2457_v18, %v873_v2  ;;  %v850_v10 = vmul.f32 %v1662_v8, %v2296_v28 }
 0x187   : > { %v688_v46 = vpop.xlane.xlu0 %687  ;;  %1673 = vrsqrt.f32 %v774_v54  ;;  %v758_v27 = vmul.f32 0.0078125, %v718_v24  ;;  %v835_v38 = vmul.f32 %v1664_v20, %v2301_v40  ;;  %v927_v28 = vadd.f32 %v2457_v18, %v888_v17 }
 0x188   : > { %v743_v0 = vmul.f32 0.0078125, %v688_v46  ;;  %1675 = vrsqrt.f32 %v789_v43  ;;  %v942_v48 = vpack.c.bf16 %v912_v9, %v911_v14  ;;  %v889_v32 = vmul.f32 %v2450_v63, %v850_v10 }
 0x189   : > { %v1666_v21 = vpop.eup %1665  ;;  %v790_v15 = vadd.f32 1e-05, %v758_v27  ;;  %v874_v30 = vmul.f32 %v2450_v63, %v835_v38 }
 0x18a   : > { %v775_v22 = vadd.f32 1e-05, %v743_v0  ;;  %v1668_v55 = vpop.eup %1667  ;;  %v690_v52 = vpop.xlane.xlu1 %689  ;;  %1521 = vmatmul.mubr.bf16.vlgmr.msra.gmra.mrb[0].mxu0 %v942_v48  ;;  %v928_v49 = vadd.f32 %v2457_v18, %v889_v32  ;;  %v836_v26 = vmul.f32 %v1666_v21, %v2306_v41 }
 0x18b   : > { %v720_v53 = vpop.xlane.xlu0 %719  ;;  %1677 = vrsqrt.f32 %v790_v15  ;;  %v744_v23 = vmul.f32 0.0078125, %v690_v52  ;;  %v851_v40 = vmul.f32 %v1668_v55, %v2314_v51  ;;  %v913_v41 = vadd.f32 %v2457_v18, %v874_v30 }
 0x18c   : > { %v759_v29 = vmul.f32 0.0078125, %v720_v53  ;;  %1679 = vrsqrt.f32 %v775_v22  ;;  %v950_v57 = vpack.c.bf16 %v928_v49, %v927_v28  ;;  %v875_v61 = vmul.f32 %v2450_v63, %v836_v26 }
 0x18d   : > { %v1670_v3 = vpop.eup %1669  ;;  %v776_v35 = vadd.f32 1e-05, %v744_v23  ;;  %v890_v2 = vmul.f32 %v2450_v63, %v851_v40 }
 0x18e   : > { %v791_v36 = vadd.f32 1e-05, %v759_v29  ;;  %v1672_v37 = vpop.eup %1671  ;;  %v722_v6 = vpop.xlane.xlu1 %721  ;;  %1537 = vmatmul.mubr.bf16.vlgmr.msra.gmra.mrb[0].mxu1 %v950_v57  ;;  %v914_v13 = vadd.f32 %v2457_v18, %v875_v61  ;;  %v852_v42 = vmul.f32 %v1670_v3, %v2319_v56 }
 0x18f   : > { %v692_v62 = vpop.xlane.xlu0 %691  ;;  %1681 = vrsqrt.f32 %v776_v35  ;;  %v760_v51 = vmul.f32 0.0078125, %v722_v6  ;;  %v837_v20 = vmul.f32 %v1672_v37, %v2324_v1  ;;  %v929_v56 = vadd.f32 %v2457_v18, %v890_v2 }
 0x190   : > { %v745_v8 = vmul.f32 0.0078125, %v692_v62  ;;  %1683 = vrsqrt.f32 %v791_v36  ;;  %v943_v54 = vpack.c.bf16 %v914_v13, %v913_v41  ;;  %v891_v43 = vmul.f32 %v2450_v63, %v852_v42 }
 0x191   : > { %v1674_v24 = vpop.eup %1673  ;;  %v792_v46 = vadd.f32 1e-05, %v760_v51  ;;  %v876_v48 = vmul.f32 %v2450_v63, %v837_v20 }
 0x192   : > { %v777_v14 = vadd.f32 1e-05, %v745_v8  ;;  %v1676_v9 = vpop.eup %1675  ;;  %v694_v10 = vpop.xlane.xlu1 %693  ;;  %1524 = vmatprep.mubr.bf16.mxu0 %v943_v54  ;;  %v930_v27 = vadd.f32 %v2457_v18, %v891_v43  ;;  %v838_v0 = vmul.f32 %v1674_v24, %v2332_v7 }
 0x193   : > { %v724_v17 = vpop.xlane.xlu0 %723  ;;  %1685 = vrsqrt.f32 %v792_v46  ;;  %v746_v32 = vmul.f32 0.0078125, %v694_v10  ;;  %v853_v1 = vmul.f32 %v1676_v9, %v2337_v12  ;;  %v915_v7 = vadd.f32 %v2457_v18, %v876_v48 }
 0x194   : > { %v761_v38 = vmul.f32 0.0078125, %v724_v17  ;;  %1687 = vrsqrt.f32 %v777_v14  ;;  %v951_v21 = vpack.c.bf16 %v930_v27, %v929_v56  ;;  %v877_v15 = vmul.f32 %v2450_v63, %v838_v0 }
 0x195   : > { %v1678_v22 = vpop.eup %1677  ;;  %v778_v55 = vadd.f32 1e-05, %v746_v32  ;;  %v892_v23 = vmul.f32 %v2450_v63, %v853_v1 }
 0x196   : > { %v793_v52 = vadd.f32 1e-05, %v761_v38  ;;  %v1680_v53 = vpop.eup %1679  ;;  %v726_v28 = vpop.xlane.xlu1 %725  ;;  %1540 = vmatprep.mubr.bf16.mxu1 %v951_v21  ;;  %v916_v26 = vadd.f32 %v2457_v18, %v877_v15  ;;  %v854_v30 = vmul.f32 %v1678_v22, %v2345_v19 }
 0x197   : > { %v696_v49 = vpop.xlane.xlu0 %695  ;;  %1689 = vrsqrt.f32 %v778_v55  ;;  %v762_v12 = vmul.f32 0.0078125, %v726_v28  ;;  %v839_v61 = vmul.f32 %v1680_v53, %v2350_v31  ;;  %v931_v19 = vadd.f32 %v2457_v18, %v892_v23 }
 0x198   : > { %v747_v29 = vmul.f32 0.0078125, %v696_v49  ;;  %1691 = vrsqrt.f32 %v793_v52  ;;  %v944_v40 = vpack.c.bf16 %v916_v26, %v915_v7  ;;  %v893_v57 = vmul.f32 %v2450_v63, %v854_v30 }
 0x199   : > { %v1682_v3 = vpop.eup %1681  ;;  %v794_v35 = vadd.f32 1e-05, %v762_v12  ;;  %v878_v42 = vmul.f32 %v2450_v63, %v839_v61 }
 0x19a   : > { %v779_v36 = vadd.f32 1e-05, %v747_v29  ;;  %v1684_v37 = vpop.eup %1683  ;;  %v698_v6 = vpop.xlane.xlu1 %697  ;;  %1525 = vmatmul.mubr.bf16.gmra.mrb[4].mxu0 %v944_v40  ;;  %v932_v41 = vadd.f32 %v2457_v18, %v893_v57  ;;  %v840_v13 = vmul.f32 %v1682_v3, %v2358_v33 }
 0x19b   : > { %v728_v62 = vpop.xlane.xlu0 %727  ;;  %1693 = vrsqrt.f32 %v794_v35  ;;  %v748_v2 = vmul.f32 0.0078125, %v698_v6  ;;  %v855_v31 = vmul.f32 %v1684_v37, %v2363_v47  ;;  %v917_v33 = vadd.f32 %v2457_v18, %v878_v42 }
 0x19c   : > { %v763_v51 = vmul.f32 0.0078125, %v728_v62  ;;  %1695 = vrsqrt.f32 %v779_v36  ;;  %v952_v8 = vpack.c.bf16 %v932_v41, %v931_v19  ;;  %v879_v54 = vmul.f32 %v2450_v63, %v840_v13 }
 0x19d   : > { %v1686_v43 = vpop.eup %1685  ;;  %v780_v20 = vadd.f32 1e-05, %v748_v2  ;;  %v894_v56 = vmul.f32 %v2450_v63, %v855_v31 }
 0x19e   : > { %v795_v24 = vadd.f32 1e-05, %v763_v51  ;;  %v1688_v46 = vpop.eup %1687  ;;  %v730_v14 = vpop.xlane.xlu1 %729  ;;  %1541 = vmatmul.mubr.bf16.gmra.mrb[4].mxu1 %v952_v8  ;;  %v918_v10 = vadd.f32 %v2457_v18, %v879_v54  ;;  %v856_v17 = vmul.f32 %v1686_v43, %v2371_v50 }
 0x19f   : > { %v700_v9 = vpop.xlane.xlu0 %699  ;;  %1697 = vrsqrt.f32 %v780_v20  ;;  %v764_v47 = vmul.f32 0.0078125, %v730_v14  ;;  %v841_v32 = vmul.f32 %v1688_v46, %v2376_v60  ;;  %v933_v50 = vadd.f32 %v2457_v18, %v894_v56 }
 0x1a0   : > { %v749_v27 = vmul.f32 0.0078125, %v700_v9  ;;  %1699 = vrsqrt.f32 %v795_v24  ;;  %v945_v0 = vpack.c.bf16 %v918_v10, %v917_v33  ;;  %v895_v48 = vmul.f32 %v2450_v63, %v856_v17 }
 0x1a1   : > { %v1690_v38 = vpop.eup %1689  ;;  %v796_v1 = vadd.f32 1e-05, %v764_v47  ;;  %v880_v28 = vmul.f32 %v2450_v63, %v841_v32 }
 0x1a2   : > { %v781_v21 = vadd.f32 1e-05, %v749_v27  ;;  %v1692_v15 = vpop.eup %1691  ;;  %v702_v22 = vpop.xlane.xlu1 %701  ;;  %1528 = vmatprep.mubr.bf16.mxu0 %v945_v0  ;;  %v934_v52 = vadd.f32 %v2457_v18, %v895_v48  ;;  %v842_v53 = vmul.f32 %v1690_v38, %v2384_v34 }
 0x1a3   : > { %v732_v55 = vpop.xlane.xlu0 %731  ;;  %1701 = vrsqrt.f32 %v796_v1  ;;  %v750_v49 = vmul.f32 0.0078125, %v702_v22  ;;  %v857_v60 = vmul.f32 %v1692_v15, %v2389_v11  ;;  %v919_v61 = vadd.f32 %v2457_v18, %v880_v28 }
 0x1a4   : > { %v765_v7 = vmul.f32 0.0078125, %v732_v55  ;;  %1703 = vrsqrt.f32 %v781_v21  ;;  %v953_v26 = vpack.c.bf16 %v934_v52, %v933_v50  ;;  %v881_v30 = vmul.f32 %v2450_v63, %v842_v53 }
 0x1a5   : > { %v1694_v23 = vpop.eup %1693  ;;  %v782_v12 = vadd.f32 1e-05, %v750_v49  ;;  %v896_v35 = vmul.f32 %v2450_v63, %v857_v60 }
 0x1a6   : > { %v797_v29 = vadd.f32 1e-05, %v765_v7  ;;  %v1696_v40 = vpop.eup %1695  ;;  %v734_v57 = vpop.xlane.xlu1 %733  ;;  %1544 = vmatprep.mubr.bf16.mxu1 %v953_v26  ;;  %v920_v34 = vadd.f32 %v2457_v18, %v881_v30  ;;  %v858_v3 = vmul.f32 %v1694_v23, %v2397_v39 }
 0x1a7   : > { %1705 = vrsqrt.f32 %v782_v12  ;;  %v766_v11 = vmul.f32 0.0078125, %v734_v57  ;;  %v843_v36 = vmul.f32 %v1696_v40, %v2402_v16  ;;  %v935_v13 = vadd.f32 %v2457_v18, %v896_v35 }
 0x1a8   : > { %1707 = vrsqrt.f32 %v797_v29  ;;  %v946_v37 = vpack.c.bf16 %v920_v34, %v919_v61  ;;  %v897_v6 = vmul.f32 %v2450_v63, %v858_v3 }
 0x1a9   : > { %v1698_v62 = vpop.eup %1697  ;;  %v798_v19 = vadd.f32 1e-05, %v766_v11  ;;  %v882_v2 = vmul.f32 %v2450_v63, %v843_v36 }
 0x1aa   : > { %v1700_v41 = vpop.eup %1699  ;;  %1529 = vmatmul.mubr.bf16.gmra.mrb[8].mxu0 %v946_v37  ;;  %v936_v42 = vadd.f32 %v2457_v18, %v897_v6  ;;  %v844_v39 = vmul.f32 %v1698_v62, %v2410_v44 }
 0x1ab   : > { %1709 = vrsqrt.f32 %v798_v19  ;;  %v859_v51 = vmul.f32 %v1700_v41, %v2415_v25  ;;  %v921_v43 = vadd.f32 %v2457_v18, %v882_v2 }
 0x1ac   : > { %v954_v16 = vpack.c.bf16 %v936_v42, %v935_v13  ;;  %v883_v31 = vmul.f32 %v2450_v63, %v844_v39 }
 0x1ad   : > { %v1702_v8 = vpop.eup %1701  ;;  %v898_v46 = vmul.f32 %v2450_v63, %v859_v51 }
 0x1ae   : > { %v1704_v54 = vpop.eup %1703  ;;  %1545 = vmatmul.mubr.bf16.gmra.mrb[8].mxu1 %v954_v16  ;;  %v922_v20 = vadd.f32 %v2457_v18, %v883_v31  ;;  %v860_v24 = vmul.f32 %v1702_v8, %v2420_v45 }
 0x1af   : > { %v845_v44 = vmul.f32 %v1704_v54, %v2425_v58  ;;  %v937_v10 = vadd.f32 %v2457_v18, %v898_v46 }
 0x1b0   : > { %v947_v14 = vpack.c.bf16 %v922_v20, %v921_v43  ;;  %v899_v9 = vmul.f32 %v2450_v63, %v860_v24 }
 0x1b1   : > { %v1706_v25 = vpop.eup %1705  ;;  %v884_v47 = vmul.f32 %v2450_v63, %v845_v44 }
 0x1b2   : > { %v1708_v33 = vpop.eup %1707  ;;  %1532 = vmatprep.mubr.bf16.mxu0 %v947_v14  ;;  %v938_v17 = vadd.f32 %v2457_v18, %v899_v9  ;;  %v846_v56 = vmul.f32 %v1706_v25, %v2430_v59 }
 0x1b3   : > { %v861_v45 = vmul.f32 %v1708_v33, %v2435_v4  ;;  %v923_v48 = vadd.f32 %v2457_v18, %v884_v47 }
 0x1b4   : > { %v955_v27 = vpack.c.bf16 %v938_v17, %v937_v10  ;;  %v885_v58 = vmul.f32 %v2450_v63, %v846_v56 }
 0x1b5   : > { %v1710_v0 = vpop.eup %1709  ;;  %v900_v59 = vmul.f32 %v2450_v63, %v861_v45 }
 0x1b6   : > { %1548 = vmatprep.mubr.bf16.mxu1 %v955_v27  ;;  %v924_v32 = vadd.f32 %v2457_v18, %v885_v58  ;;  %v862_v38 = vmul.f32 %v1710_v0, %v2440_v5 }
 0x1b7   : > { %v939_v21 = vadd.f32 %v2457_v18, %v900_v59 }
 0x1b8   : > { %v948_v1 = vpack.c.bf16 %v924_v32, %v923_v48  ;;  %v901_v4 = vmul.f32 %v2450_v63, %v862_v38 }
 0x1ba   : > { %1533 = vmatmul.mubr.bf16.gmra.mrb[12].mxu0 %v948_v1  ;;  %v940_v15 = vadd.f32 %v2457_v18, %v901_v4 }
 0x1bc   : > { %v956_v22 = vpack.c.bf16 %v940_v15, %v939_v21 }
 0x1be   : > { %1549 = vmatmul.mubr.bf16.gmra.mrb[12].mxu1 %v956_v22 }
 0x1bf   : > { %1754 = shalt.err (!%p1751_p4)
}
 0x1c0   : > { %s1755_s13 = scalar_lea.hbm %s2558_s17, 4096  ;;  %s1759_s8 = scalar_lea.hbm %s2729_s7, 8192 }
 0x1c1   : > { %p1756_p7 = scmp.ne.s32.totalorder %s2558_s17, %s1755_s13  ;;  %p1760_p1 = scmp.lt.u32.totalorder %s2558_s17, %s2729_s7 }
 0x1c2   : > { %p1761_p3 = scmp.lt.u32.totalorder %s1759_s8, %s1755_s13  ;;  %p1763_p8 = scmp.lt.u32.totalorder %s1755_s13, %s2558_s17 }
 0x1c3   : > { %p1757_p10 = pnand %p1756_p7, %p2738_p11 }
 0x1c4   : > { %p1762_p9 = por %p1761_p3, %p1760_p1 }
 0x1c5   : > { %p1758_p12 = pneg %p1757_p10 }
 0x1c6   : > { %p1764_p0 = por %p1763_p8, %p1762_p9 }
 0x1c8   : > { %p1765_p6 = pnand %p1764_p0, %p1758_p12 }
 0x1ca   : > { %1768 = shalt.err (!%p1765_p6)
}
 0x1cb   : > { %s1861_s30 = smov 128   ;;  %s1862_s18 = smov 8   ;;  %v2593_v5 = vld [vmem:[%s2727_s5] ss:$0 sm:$0xff] }
 0x1cc   : > { %1571 = dma.vmem_to_hbm [thread:$0]  (%p2738_p11), %s2561_s23, 4096, %s2558_s17, %s1259_s22, %s1861_s30, %s1861_s30, %s1862_s18  }
 0x1cd   : > { %s2598_s13 = scalar_lea.vmem [#allocation6], %s2019_s21  ;;  %s2739_s17 = sshll.u32 %s1847_s27, 12 }
 0x1ce   : > { %s1273_s21 = sshll.u32 %s2598_s13, 4  ;;  %s2666_s11 = scalar_lea.hbm %s2728_s6, %s2739_s17  ;;  %s2668_s21 = int_to_ptr.vmem [resolvable:$true] %s1273_s21 }
 0x1cf   : > { %s1254_s8 = scalar_lea.sflag [#allocation5], %s2016_s20  ;;  %s1769_s10 = scalar_lea.vmem %s2668_s21, 4096 }
 0x1d0   : > { %p1770_p13 = scmp.ne.s32.totalorder %s2668_s21, %s1769_s10  ;;  %s1863_s19 = smov [#allocation6]  }
 0x1d1   : > { %s1773_s27 = sshll.u32 %s1863_s19, 4  ;;  %s1774_s27 = int_to_ptr.vmem [resolvable:$false] %s1773_s27 }
 0x1d2   : > { %p1771_p2 = pnand %p1770_p13, %p2738_p11  ;;  %s1775_s12 = scalar_lea.vmem %s1774_s27, 8192 }
 0x1d3   : > { %p1776_p4 = scmp.lt.s32.totalorder %s2668_s21, %s1774_s27  ;;  %p1777_p7 = scmp.lt.s32.totalorder %s1775_s12, %s1769_s10 }
 0x1d4   : > { %p1772_p5 = pneg %p1771_p2 }
 0x1d5   : > { %p1778_p10 = por %p1777_p7, %p1776_p4 }
 0x1d7   : > { %p1779_p12 = pnand %p1778_p10, %p1772_p5 }
 0x25d   : > { %v1522_v63 = vpop.f32.mrb[0].mxu0 }
 0x25e   : > { %v1103_v18 = vadd.f32 %v1522_v63, %v2593_v5  ;;  %v1094_v55 = vpop.f32.mrb[1].mxu0 }
 0x25f   : > { %v1095_v50 = vadd.f32 %v2593_v5, %v1094_v55  ;;  %v1523_v52 = vpop.f32.mrb[2].mxu0 }
 0x260   : > { %1223 = vst [vmem:[%s2598_s13 + $0x10] sm:$0xff] %v1103_v18  ;;  %v1106_v53 = vadd.f32 %v1523_v52, %v2593_v5  ;;  %v1097_v28 = vpop.f32.mrb[3].mxu0 }
 0x261   : > { %1221 = vst [vmem:[%s2598_s13] sm:$0xff] %v1095_v50  ;;  %v1098_v49 = vadd.f32 %v2593_v5, %v1097_v28  ;;  %v1538_v7 = vpop.f32.mrb[0].mxu1 }
 0x262   : > { %1224 = vst [vmem:[%s2598_s13 + $0x18] sm:$0xff] %v1106_v53  ;;  %v1167_v60 = vadd.f32 %v1538_v7, %v2593_v5  ;;  %v1158_v26 = vpop.f32.mrb[1].mxu1 }
 0x263   : > { %1222 = vst [vmem:[%s2598_s13 + $0x8] sm:$0xff] %v1098_v49  ;;  %v1159_v30 = vadd.f32 %v2593_v5, %v1158_v26  ;;  %v1539_v23 = vpop.f32.mrb[2].mxu1 }
 0x264   : > { %1239 = vst [vmem:[%s2598_s13 + $0x90] sm:$0xff] %v1167_v60  ;;  %v1170_v12 = vadd.f32 %v1539_v23, %v2593_v5  ;;  %v1161_v29 = vpop.f32.mrb[3].mxu1 }
 0x265   : > { %1237 = vst [vmem:[%s2598_s13 + $0x80] sm:$0xff] %v1159_v30  ;;  %v1162_v40 = vadd.f32 %v2593_v5, %v1161_v29 }
 0x266   : > { %1240 = vst [vmem:[%s2598_s13 + $0x98] sm:$0xff] %v1170_v12 }
 0x267   : > { %1238 = vst [vmem:[%s2598_s13 + $0x88] sm:$0xff] %v1162_v40 }
 0x26d   : > { %v1526_v57 = vpop.f32.mrb[4].mxu0 }
 0x26e   : > { %v1119_v61 = vadd.f32 %v1526_v57, %v2593_v5  ;;  %v1110_v34 = vpop.f32.mrb[5].mxu0 }
 0x26f   : > { %v1111_v3 = vadd.f32 %v2593_v5, %v1110_v34  ;;  %v1527_v35 = vpop.f32.mrb[6].mxu0 }
 0x270   : > { %1227 = vst [vmem:[%s2598_s13 + $0x30] sm:$0xff] %v1119_v61  ;;  %v1122_v11 = vadd.f32 %v1527_v35, %v2593_v5  ;;  %v1113_v36 = vpop.f32.mrb[7].mxu0 }
 0x271   : > { %1225 = vst [vmem:[%s2598_s13 + $0x20] sm:$0xff] %v1111_v3  ;;  %v1114_v37 = vadd.f32 %v2593_v5, %v1113_v36  ;;  %v1542_v6 = vpop.f32.mrb[4].mxu1 }
 0x272   : > { %1228 = vst [vmem:[%s2598_s13 + $0x38] sm:$0xff] %v1122_v11  ;;  %v1183_v62 = vadd.f32 %v1542_v6, %v2593_v5  ;;  %v1174_v19 = vpop.f32.mrb[5].mxu1 }
 0x273   : > { %1226 = vst [vmem:[%s2598_s13 + $0x28] sm:$0xff] %v1114_v37  ;;  %v1175_v41 = vadd.f32 %v2593_v5, %v1174_v19  ;;  %v1543_v13 = vpop.f32.mrb[6].mxu1 }
 0x274   : > { %1243 = vst [vmem:[%s2598_s13 + $0xb0] sm:$0xff] %v1183_v62  ;;  %v1186_v42 = vadd.f32 %v1543_v13, %v2593_v5  ;;  %v1177_v39 = vpop.f32.mrb[7].mxu1 }
 0x275   : > { %1241 = vst [vmem:[%s2598_s13 + $0xa0] sm:$0xff] %v1175_v41  ;;  %v1178_v2 = vadd.f32 %v2593_v5, %v1177_v39 }
 0x276   : > { %1244 = vst [vmem:[%s2598_s13 + $0xb8] sm:$0xff] %v1186_v42 }
 0x277   : > { %1242 = vst [vmem:[%s2598_s13 + $0xa8] sm:$0xff] %v1178_v2 }
 0x27d   : > { %v1530_v51 = vpop.f32.mrb[8].mxu0 }
 0x27e   : > { %v1135_v16 = vadd.f32 %v1530_v51, %v2593_v5  ;;  %v1126_v31 = vpop.f32.mrb[9].mxu0 }
 0x27f   : > { %v1127_v8 = vadd.f32 %v2593_v5, %v1126_v31  ;;  %v1531_v54 = vpop.f32.mrb[10].mxu0 }
 0x280   : > { %1231 = vst [vmem:[%s2598_s13 + $0x50] sm:$0xff] %v1135_v16  ;;  %v1138_v43 = vadd.f32 %v1531_v54, %v2593_v5  ;;  %v1129_v20 = vpop.f32.mrb[11].mxu0 }
 0x281   : > { %1229 = vst [vmem:[%s2598_s13 + $0x40] sm:$0xff] %v1127_v8  ;;  %v1130_v24 = vadd.f32 %v2593_v5, %v1129_v20  ;;  %v1546_v46 = vpop.f32.mrb[8].mxu1 }
 0x282   : > { %1232 = vst [vmem:[%s2598_s13 + $0x58] sm:$0xff] %v1138_v43  ;;  %v1199_v44 = vadd.f32 %v1546_v46, %v2593_v5  ;;  %v1190_v14 = vpop.f32.mrb[9].mxu1 }
 0x283   : > { %1230 = vst [vmem:[%s2598_s13 + $0x48] sm:$0xff] %v1130_v24  ;;  %v1191_v9 = vadd.f32 %v2593_v5, %v1190_v14  ;;  %v1547_v25 = vpop.f32.mrb[10].mxu1 }
 0x284   : > { %1247 = vst [vmem:[%s2598_s13 + $0xd0] sm:$0xff] %v1199_v44  ;;  %v1202_v33 = vadd.f32 %v1547_v25, %v2593_v5  ;;  %v1193_v10 = vpop.f32.mrb[11].mxu1 }
 0x285   : > { %1245 = vst [vmem:[%s2598_s13 + $0xc0] sm:$0xff] %v1191_v9  ;;  %v1194_v17 = vadd.f32 %v2593_v5, %v1193_v10 }
 0x286   : > { %1248 = vst [vmem:[%s2598_s13 + $0xd8] sm:$0xff] %v1202_v33 }
 0x287   : > { %1246 = vst [vmem:[%s2598_s13 + $0xc8] sm:$0xff] %v1194_v17 }
 0x28d   : > { %v1534_v56 = vpop.f32.mrb[12].mxu0 }
 0x28e   : > { %v1151_v47 = vadd.f32 %v1534_v56, %v2593_v5  ;;  %v1142_v45 = vpop.f32.mrb[13].mxu0 }
 0x28f   : > { %v1143_v27 = vadd.f32 %v2593_v5, %v1142_v45  ;;  %v1535_v58 = vpop.f32.mrb[14].mxu0 }
 0x290   : > { %1235 = vst [vmem:[%s2598_s13 + $0x70] sm:$0xff] %v1151_v47  ;;  %v1154_v0 = vadd.f32 %v1535_v58, %v2593_v5  ;;  %v1145_v48 = vpop.f32.mrb[15].mxu0 }
 0x291   : > { %1233 = vst [vmem:[%s2598_s13 + $0x60] sm:$0xff] %v1143_v27  ;;  %v1146_v32 = vadd.f32 %v2593_v5, %v1145_v48  ;;  %v1550_v38 = vpop.f32.mrb[12].mxu1 }
 0x292   : > { %1236 = vst [vmem:[%s2598_s13 + $0x78] sm:$0xff] %v1154_v0  ;;  %v1215_v59 = vadd.f32 %v1550_v38, %v2593_v5  ;;  %v1206_v1 = vpop.f32.mrb[13].mxu1 }
 0x293   : > { %1234 = vst [vmem:[%s2598_s13 + $0x68] sm:$0xff] %v1146_v32  ;;  %v1207_v4 = vadd.f32 %v2593_v5, %v1206_v1  ;;  %v1551_v21 = vpop.f32.mrb[14].mxu1 }
 0x294   : > { %1251 = vst [vmem:[%s2598_s13 + $0xf0] sm:$0xff] %v1215_v59  ;;  %v1218_v15 = vadd.f32 %v1551_v21, %v2593_v5  ;;  %v1209_v22 = vpop.f32.mrb[15].mxu1 }
 0x295   : > { %1249 = vst [vmem:[%s2598_s13 + $0xe0] sm:$0xff] %v1207_v4  ;;  %v1210_v63 = vadd.f32 %v2593_v5, %v1209_v22 }
 0x296   : > { %1252 = vst [vmem:[%s2598_s13 + $0xf8] sm:$0xff] %v1218_v15 }
 0x297   : > { %1250 = vst [vmem:[%s2598_s13 + $0xe8] sm:$0xff] %v1210_v63 }
 0x298   : > { %1782 = shalt.err (!%p1779_p12)
}
 0x299   : > { %s1783_s13 = scalar_lea.hbm %s2666_s11, 4096  ;;  %s1787_s22 = scalar_lea.hbm %s2728_s6, 8192 }
 0x29a   : > { %p1784_p1 = scmp.ne.s32.totalorder %s2666_s11, %s1783_s13  ;;  %p1788_p8 = scmp.lt.u32.totalorder %s2666_s11, %s2728_s6 }
 0x29b   : > { %p1789_p0 = scmp.lt.u32.totalorder %s1787_s22, %s1783_s13  ;;  %p1791_p13 = scmp.lt.u32.totalorder %s1783_s13, %s2666_s11 }
 0x29c   : > { %p1785_p3 = pnand %p1784_p1, %p2738_p11 }
 0x29d   : > { %p1790_p6 = por %p1789_p0, %p1788_p8 }
 0x29e   : > { %p1786_p9 = pneg %p1785_p3 }
 0x29f   : > { %p1792_p2 = por %p1791_p13, %p1790_p6 }
 0x2a1   : > { %p1793_p5 = pnand %p1792_p2, %p1786_p9 }
 0x2a3   : > { %1796 = shalt.err (!%p1793_p5)
}
 0x2a4   : > { %1570 = dma.vmem_to_hbm [thread:$0]  (%p2738_p11), %s2668_s21, 4096, %s2666_s11, %s1254_s8, %s1861_s30, %s1861_s30, %s1862_s18  }
 0x2a5 PF: > { %s1304_s10 = sand.u32 1, %s1835_s24   ;;  %p2740_p4 = scmp.ne.s32.totalorder %s2735_s16, 0 }
 0x2a6   : > { %p2741_p7 = scmp.ge.s32.totalorder %s1855_s29, 2  ;;  %s1305_s12 = scalar_lea.sflag [#allocation5], %s1304_s10 }
 0x2a8   : > { %p1579_p10 = pnand %p2741_p7, %p2740_p4 }
 0x2aa   : > { %1826 = dma.done.wait (!%p1579_p10), %s1305_s12, 4096  }
 0x2ab   : > { %1828 = vsyncadd (!%p1579_p10), %s1305_s12, 4294963200  ;;  %s1314_s14 = scalar_lea.sflag [#allocation8], %s1304_s10 }
 0x2ac   : > { %1830 = dma.done.wait (!%p1579_p10), %s1314_s14, 4096  }
 0x2ad   : > { %1832 = vsyncadd (!%p1579_p10), %s1314_s14, 4294963200  ;;  %s27_s29 = sadd.s32 1, %s1855_s29   ;;  %s2742_s24 = smov %s1839_s25 }
 0x2ae   : > { %p24_p12 = scmp.ge.s32.totalorder %s27_s29, 4   ;;  %s2743_s25 = smov %s1843_s26 }
 0x2af   : > { %s2744_s26 = smov %s1960_s15  ;;  %s2745_s27 = smov %s1851_s28 }
 0x2b0   : > { %s2746_s28 = smov %s2748_s9  ;;  %26 = sbr.rel (!%p24_p12) target bundleno = 8 (0x8), region = 119 }
 0x2b7   :  { %1319 = vsyncpa [#allocation4], 1 }
 0x2b8   :  { %1321 = vsyncpa [#allocation4 + $0x1], 1 }
 0x2b9   :  { %1322 = vsyncpa [#allocation5], 1 }
 0x2ba   :  { %1324 = vsyncpa [#allocation5 + $0x1], 1 }
 0x2bb   :  { %1325 = vsyncpa [#allocation8], 1 }
 0x2bc   :  { %1327 = vsyncpa [#allocation8 + $0x1], 1 }

</bundles_post_ra>
